<compile_context>
chip_gen: v5e
topology: v5e:2x2
jax: 0.10.0
libtpu: 0.0.40
codegen_flags: <defaults>
</compile_context>

<pallas_src>
import functools

import jax
import jax.numpy as jnp
from jax.experimental import pallas as pl
from jax.experimental.pallas import tpu as pltpu

NEG_SLOPE = 0.01                  # F.leaky_relu default
LANE = 128                        # feature dims padded to multiples of this
TM_TARGET = 256                   # dst tile (MXU-friendly v6e/v7x, 128-mult for v5e)
TK_TARGET = 512                   # src (contraction) tile
VMEM_LIMIT = 48 * 1024 * 1024     # fits v7x (64 MiB) with headroom; fine on v5e/v6e


def _round_up(x, m):
    return (x + m - 1) // m * m


def _pick_tile(n_pad, target):
    """Largest tile <= target that divides n_pad (n_pad is a multiple of 128)."""
    t = min(target, n_pad)
    while n_pad % t:
        t //= 2
    return t


# --------------------------------------------------------------------------
# RGCN layer (HeteroGraphConv of GraphConv(norm='right'), aggregate='sum')
#   out = sum_r [ (Adj_r @ (X @ W_r)) * invdeg_r ] + sum_r b_r   (opt. leaky_relu)
# Grid = (dst tiles [parallel], relations, src tiles) — adjacency is tiled,
# per-relation partial agg + degree live in VMEM scratch, output block is
# resident across the two reduction axes (accumulator pattern).
# --------------------------------------------------------------------------
def _rgcn_kernel(adj_ref, xw_ref, bsum_ref, out_ref, agg_ref, deg_ref,
                 *, apply_leaky):
    r = pl.program_id(1)
    s = pl.program_id(2)
    n_r = pl.num_programs(1)
    n_s = pl.num_programs(2)

    @pl.when((r == 0) & (s == 0))
    def _():
        out_ref[...] = jnp.zeros_like(out_ref)

    @pl.when(s == 0)
    def _():
        agg_ref[...] = jnp.zeros_like(agg_ref)
        deg_ref[...] = jnp.zeros_like(deg_ref)

    a = adj_ref[0].astype(jnp.float32)        # (TM, TK); bf16 in HBM, exact 0/1
    agg_ref[...] += jnp.dot(a, xw_ref[0], preferred_element_type=jnp.float32)
    deg_ref[...] += jnp.sum(a, axis=-1, keepdims=True)   # in-kernel degree

    @pl.when(s == n_s - 1)
    def _():
        # DGL GraphConv(norm='right'): divide by in-degree clamped to >= 1.
        invdeg = pl.reciprocal(jnp.maximum(deg_ref[...], 1.0), approx=False)
        out_ref[...] += agg_ref[...] * invdeg

    @pl.when((r == n_r - 1) & (s == n_s - 1))
    def _():
        v = out_ref[...] + bsum_ref[...]      # bias hoisted: sum_r b_r added once
        if apply_leaky:
            v = jnp.where(v >= 0, v, NEG_SLOPE * v)
        out_ref[...] = v


def rgcn_layer(adj, x, w, b, *, apply_leaky):
    """adj: (R,N,N) 0/1, x: (N,F_in), w: (R,F_in,F_out), b: (R,F_out) -> (N,F_out)."""
    R, N, _ = adj.shape
    F_in, F_out = w.shape[1], w.shape[2]
    n_pad = _round_up(N, LANE)
    fi_pad = _round_up(F_in, LANE)
    fo_pad = _round_up(F_out, LANE)
    tm = _pick_tile(n_pad, TM_TARGET)
    tk = _pick_tile(n_pad, TK_TARGET)

    # bf16 adjacency (exact for 0/1) halves the dominant HBM stream.
    adj_p = jnp.zeros((R, n_pad, n_pad), jnp.bfloat16)
    adj_p = adj_p.at[:, :N, :N].set(adj.astype(jnp.bfloat16))
    x_p = jnp.zeros((n_pad, fi_pad), jnp.float32).at[:N, :F_in].set(x)
    w_p = jnp.zeros((R, fi_pad, fo_pad), jnp.float32).at[:, :F_in, :F_out].set(w)
    # Hoisted X @ W_r: one batched matmul per layer, outside the tiled reduction.
    # TODO(synk): cast xw/adj fully to bf16 (fp8 on v7x) for a further ~2x on HBM
    #             traffic if a small quantization error is acceptable.
    xw = jnp.einsum('nf,rfo->rno', x_p, w_p)                    # (R, n_pad, fo_pad)
    b_sum = jnp.zeros((1, fo_pad), jnp.float32).at[0, :F_out].set(b.sum(axis=0))

    grid = (n_pad // tm, R, n_pad // tk)   # (dst tiles, relations, src tiles)

    out_p = pl.pallas_call(
        functools.partial(_rgcn_kernel, apply_leaky=apply_leaky),
        out_shape=jax.ShapeDtypeStruct((n_pad, fo_pad), jnp.float32),
        grid_spec=pltpu.PrefetchScalarGridSpec(
            num_scalar_prefetch=0,
            grid=grid,
            in_specs=[
                pl.BlockSpec((1, tm, tk), lambda d, r, s: (r, d, s)),      # adj tile
                pl.BlockSpec((1, tk, fo_pad), lambda d, r, s: (r, s, 0)),  # XW_r tile
                pl.BlockSpec((1, fo_pad), lambda d, r, s: (0, 0)),         # sum_r b_r
            ],
            out_specs=pl.BlockSpec((tm, fo_pad), lambda d, r, s: (d, 0)),
            scratch_shapes=[
                pltpu.VMEM((tm, fo_pad), jnp.float32),   # per-relation partial agg
                pltpu.VMEM((tm, 1), jnp.float32),        # per-relation in-degree
            ]),
        compiler_params=pltpu.CompilerParams(
            dimension_semantics=("parallel", "arbitrary", "arbitrary"),
            vmem_limit_bytes=VMEM_LIMIT),
    )(adj_p, xw, b_sum)
    return out_p[:N, :F_out]


# --------------------------------------------------------------------------
# ScorePredictor: u_dot_v -> score[e] = <h[src[e]], h[dst[e]]>
# Single fused, E-blocked kernel over all (etype, pos/neg) edge lists.
# --------------------------------------------------------------------------
def _edge_dot_kernel(xu_ref, xv_ref, o_ref):
    o_ref[...] = jnp.sum(xu_ref[...] * xv_ref[...], axis=-1, keepdims=True)


def edge_scores_fused(h, edge_lists, *, te_target=256):
    """edge_lists: list of (src, dst) index arrays.  Returns list of (E_i, 1)."""
    sizes = [int(s.shape[0]) for s, _ in edge_lists]
    src_all = jnp.concatenate([s for s, _ in edge_lists]).astype(jnp.int32)
    dst_all = jnp.concatenate([d for _, d in edge_lists]).astype(jnp.int32)
    e_tot = src_all.shape[0]

    n, f = h.shape
    f_pad = _round_up(f, LANE)
    h_p = jnp.zeros((n, f_pad), jnp.float32).at[:, :f].set(h)

    te = min(te_target, _round_up(e_tot, 8))
    e_pad = _round_up(e_tot, te)
    src_p = jnp.zeros((e_pad,), jnp.int32).at[:e_tot].set(src_all)
    dst_p = jnp.zeros((e_pad,), jnp.int32).at[:e_tot].set(dst_all)
    xu = h_p[src_p]    # gathers stay in XLA (glue); the kernel fuses mul + reduce
    xv = h_p[dst_p]

    scores = pl.pallas_call(
        _edge_dot_kernel,
        out_shape=jax.ShapeDtypeStruct((e_pad, 1), jnp.float32),
        grid_spec=pltpu.PrefetchScalarGridSpec(
            num_scalar_prefetch=0,
            grid=(e_pad // te,),
            in_specs=[pl.BlockSpec((te, f_pad), lambda e: (e, 0)),
                      pl.BlockSpec((te, f_pad), lambda e: (e, 0))],
            out_specs=pl.BlockSpec((te, 1), lambda e: (e, 0))),
        compiler_params=pltpu.CompilerParams(
            dimension_semantics=("parallel",),
            vmem_limit_bytes=VMEM_LIMIT),
    )(xu, xv)

    out, off = [], 0
    for sz in sizes:
        out.append(scores[off:off + sz])
        off += sz
    return out


# --------------------------------------------------------------------------
# Full model forward
# --------------------------------------------------------------------------
@jax.jit
def model_forward(params, blocks_adj, pos_edges, neg_edges, x):
    adj1, adj2 = blocks_adj
    h = rgcn_layer(adj1, x, params["w1"], params["b1"], apply_leaky=True)
    h = rgcn_layer(adj2, h, params["w2"], params["b2"], apply_leaky=False)
    etypes = sorted(pos_edges.keys())
    edge_lists = [pos_edges[et] for et in etypes] + [neg_edges[et] for et in etypes]
    scores = edge_scores_fused(h, edge_lists)
    k = len(etypes)
    pos_score = {et: scores[i] for i, et in enumerate(etypes)}
    neg_score = {et: scores[k + i] for i, et in enumerate(etypes)}
    return pos_score, neg_score


# --------------------------------------------------------------------------
# Pure-JAX reference for a correctness sanity check
# --------------------------------------------------------------------------
def ref_forward(params, blocks_adj, pos_edges, neg_edges, x):
    def layer(adj, x, w, b):
        deg = jnp.sum(adj, axis=-1, keepdims=True)
        inv = 1.0 / jnp.maximum(deg, 1.0)
        out = 0.0
        for r in range(adj.shape[0]):
            out = out + (adj[r] @ (x @ w[r])) * inv[r] + b[r]
        return out

    adj1, adj2 = blocks_adj
    h = layer(adj1, x, params["w1"], params["b1"])
    h = jnp.where(h >= 0, h, NEG_SLOPE * h)
    h = layer(adj2, h, params["w2"], params["b2"])
    score = lambda s, d: jnp.sum(h[s] * h[d], axis=-1, keepdims=True)
    pos = {et: score(s, d) for et, (s, d) in pos_edges.items()}
    neg = {et: score(s, d) for et, (s, d) in neg_edges.items()}
    return pos, neg


if __name__ == "__main__":
    key = jax.random.PRNGKey(0)
    etypes = ["rel_a", "rel_b", "rel_c"]
    R = len(etypes)
    N = 16                    # nodes
    IN, HID, OUT = 16, 32, 8
    E = 8                     # edges per etype in pos/neg graphs

    ks = jax.random.split(key, 8)

    # Parameters (GraphConv: weight (in, out), bias (out,) per relation)
    params = {
        "w1": jax.random.normal(ks[0], (R, IN, HID), jnp.float32) * 0.1,
        "b1": jax.random.normal(ks[1], (R, HID), jnp.float32) * 0.1,
        "w2": jax.random.normal(ks[2], (R, HID, OUT), jnp.float32) * 0.1,
        "b2": jax.random.normal(ks[3], (R, OUT), jnp.float32) * 0.1,
    }

    # Message-flow-graph "blocks": dense per-relation adjacency [R, dst, src]
    adj1 = jax.random.bernoulli(ks[4], 0.3, (R, N, N)).astype(jnp.float32)
    adj2 = jax.random.bernoulli(ks[5], 0.3, (R, N, N)).astype(jnp.float32)

    # Positive / negative graphs: per-etype (src, dst) edge index lists
    pos_edges, neg_edges = {}, {}
    for i, et in enumerate(etypes):
        kp = jax.random.fold_in(ks[6], i)
        kn = jax.random.fold_in(ks[7], i)
        pos_edges[et] = (jax.random.randint(kp, (E,), 0, N),
                         jax.random.randint(jax.random.fold_in(kp, 1), (E,), 0, N))
        neg_edges[et] = (jax.random.randint(kn, (E,), 0, N),
                         jax.random.randint(jax.random.fold_in(kn, 1), (E,), 0, N))

    x = jax.random.normal(jax.random.fold_in(key, 99), (N, IN), jnp.float32)

    pos_score, neg_score = model_forward(params, (adj1, adj2),
                                         pos_edges, neg_edges, x)
    jax.block_until_ready((pos_score, neg_score))

    # sanity check against pure-JAX reference
    rpos, rneg = ref_forward(params, (adj1, adj2), pos_edges, neg_edges, x)
    for et in etypes:
        assert pos_score[et].shape == (E, 1)
        assert jnp.allclose(pos_score[et], rpos[et], atol=2e-4, rtol=2e-4), et
        assert jnp.allclose(neg_score[et], rneg[et], atol=2e-4, rtol=2e-4), et

    print("KERNEL_OK")
</pallas_src>

<mosaic_0001>
module attributes {stable_mosaic.version = 11 : i64} {
  func.func @_rgcn_kernel(%arg0: i32, %arg1: i32, %arg2: i32, %arg3: memref<1x128x128xbf16, #tpu.memory_space<vmem>>, %arg4: memref<1x128x128xf32, #tpu.memory_space<vmem>>, %arg5: memref<1x128xf32, #tpu.memory_space<vmem>>, %arg6: memref<128x128xf32, #tpu.memory_space<vmem>>, %arg7: memref<128x128xf32, #tpu.memory_space<vmem>>, %arg8: memref<128x1xf32, #tpu.memory_space<vmem>>) attributes {dimension_semantics = [#tpu.dimension_semantics<parallel>, #tpu.dimension_semantics<arbitrary>, #tpu.dimension_semantics<arbitrary>], iteration_bounds = array<i64: 1, 3, 1>, scalar_prefetch = 0 : i64, scratch_operands = 2 : i64, tpu.core_type = #tpu.core_type<tc>, window_params = [{transform_indices = @transform_0, window_bounds = array<i64: 1, 128, 128>}, {transform_indices = @transform_1, window_bounds = array<i64: 1, 128, 128>}, {pipeline_mode = #tpu.pipeline_mode<synchronous>, transform_indices = @transform_2, window_bounds = array<i64: 1, 128>}, {transform_indices = @transform_3, window_bounds = array<i64: 128, 128>}]} {
    %c0_i32 = arith.constant 0 : i32
    %0 = arith.cmpi eq, %arg1, %c0_i32 : i32
    %c0_i32_0 = arith.constant 0 : i32
    %1 = arith.cmpi eq, %arg2, %c0_i32_0 : i32
    %2 = arith.andi %0, %1 : i1
    %3 = arith.extui %2 : i1 to i32
    %c0_i32_1 = arith.constant 0 : i32
    %4 = arith.cmpi ne, %3, %c0_i32_1 : i32
    scf.if %4 {
      %cst_22 = arith.constant 0.000000e+00 : f32
      %30 = vector.broadcast %cst_22 : f32 to vector<128x128xf32>
      %c0_23 = arith.constant 0 : index
      %c0_24 = arith.constant 0 : index
      %31 = vector.load %arg6[%c0_23, %c0_24] : memref<128x128xf32, #tpu.memory_space<vmem>>, vector<128x128xf32>
      tpu.vector_store %arg6[%c0_23, %c0_24], %30 {strides = array<i32>} : memref<128x128xf32, #tpu.memory_space<vmem>>, vector<128x128xf32>,
    } else {
    }
    %c0_i32_2 = arith.constant 0 : i32
    %5 = arith.cmpi eq, %arg2, %c0_i32_2 : i32
    %6 = arith.extui %5 : i1 to i32
    %c0_i32_3 = arith.constant 0 : i32
    %7 = arith.cmpi ne, %6, %c0_i32_3 : i32
    scf.if %7 {
      %cst_22 = arith.constant 0.000000e+00 : f32
      %30 = vector.broadcast %cst_22 : f32 to vector<128x128xf32>
      %c0_23 = arith.constant 0 : index
      %c0_24 = arith.constant 0 : index
      %31 = vector.load %arg7[%c0_23, %c0_24] : memref<128x128xf32, #tpu.memory_space<vmem>>, vector<128x128xf32>
      tpu.vector_store %arg7[%c0_23, %c0_24], %30 {strides = array<i32>} : memref<128x128xf32, #tpu.memory_space<vmem>>, vector<128x128xf32>,
      %cst_25 = arith.constant 0.000000e+00 : f32
      %32 = vector.broadcast %cst_25 : f32 to vector<128x1xf32>
      %c0_26 = arith.constant 0 : index
      %c0_27 = arith.constant 0 : index
      %33 = vector.load %arg8[%c0_26, %c0_27] : memref<128x1xf32, #tpu.memory_space<vmem>>, vector<128x1xf32>
      tpu.vector_store %arg8[%c0_26, %c0_27], %32 {strides = array<i32>} : memref<128x1xf32, #tpu.memory_space<vmem>>, vector<128x1xf32>,
    } else {
    }
    %c0 = arith.constant 0 : index
    %c0_4 = arith.constant 0 : index
    %c0_5 = arith.constant 0 : index
    %8 = vector.load %arg3[%c0, %c0_4, %c0_5] : memref<1x128x128xbf16, #tpu.memory_space<vmem>>, vector<1x128x128xbf16>
    %9 = vector.shape_cast %8 : vector<1x128x128xbf16> to vector<128x128xbf16>
    %10 = arith.extf %9 : vector<128x128xbf16> to vector<128x128xf32>
    %c0_6 = arith.constant 0 : index
    %c0_7 = arith.constant 0 : index
    %11 = vector.load %arg7[%c0_6, %c0_7] : memref<128x128xf32, #tpu.memory_space<vmem>>, vector<128x128xf32>
    %c0_8 = arith.constant 0 : index
    %c0_9 = arith.constant 0 : index
    %c0_10 = arith.constant 0 : index
    %12 = vector.load %arg4[%c0_8, %c0_9, %c0_10] : memref<1x128x128xf32, #tpu.memory_space<vmem>>, vector<1x128x128xf32>
    %13 = vector.shape_cast %12 : vector<1x128x128xf32> to vector<128x128xf32>
    %cst = arith.constant dense<0.000000e+00> : vector<128x128xf32>
    %14 = tpu.matmul %10, %13, %cst {dimension_numbers = #tpu.dot_dimension_numbers<[1], [0], [0], [1], [0, 0, 1, 1], [], []>} : vector<128x128xf32>, vector<128x128xf32>, vector<128x128xf32> -> vector<128x128xf32>
    %15 = arith.addf %11, %14 : vector<128x128xf32>
    %c0_11 = arith.constant 0 : index
    %c0_12 = arith.constant 0 : index
    %16 = vector.load %arg7[%c0_11, %c0_12] : memref<128x128xf32, #tpu.memory_space<vmem>>, vector<128x128xf32>
    tpu.vector_store %arg7[%c0_11, %c0_12], %15 {strides = array<i32>} : memref<128x128xf32, #tpu.memory_space<vmem>>, vector<128x128xf32>,
    %c0_13 = arith.constant 0 : index
    %c0_14 = arith.constant 0 : index
    %17 = vector.load %arg8[%c0_13, %c0_14] : memref<128x1xf32, #tpu.memory_space<vmem>>, vector<128x1xf32>
    %cst_15 = arith.constant dense<0.000000e+00> : vector<128xf32>
    %18 = vector.multi_reduction <add>, %10, %cst_15 [1] : vector<128x128xf32> to vector<128xf32>
    %19 = vector.shape_cast %18 : vector<128xf32> to vector<128x1xf32>
    %20 = arith.addf %17, %19 : vector<128x1xf32>
    %c0_16 = arith.constant 0 : index
    %c0_17 = arith.constant 0 : index
    %21 = vector.load %arg8[%c0_16, %c0_17] : memref<128x1xf32, #tpu.memory_space<vmem>>, vector<128x1xf32>
    tpu.vector_store %arg8[%c0_16, %c0_17], %20 {strides = array<i32>} : memref<128x1xf32, #tpu.memory_space<vmem>>, vector<128x1xf32>,
    %c0_i32_18 = arith.constant 0 : i32
    %22 = arith.cmpi eq, %arg2, %c0_i32_18 : i32
    %23 = arith.extui %22 : i1 to i32
    %c0_i32_19 = arith.constant 0 : i32
    %24 = arith.cmpi ne, %23, %c0_i32_19 : i32
    scf.if %24 {
      %c0_22 = arith.constant 0 : index
      %c0_23 = arith.constant 0 : index
      %30 = vector.load %arg8[%c0_22, %c0_23] : memref<128x1xf32, #tpu.memory_space<vmem>>, vector<128x1xf32>
      %cst_24 = arith.constant 1.000000e+00 : f32
      %31 = vector.broadcast %cst_24 : f32 to vector<128x1xf32>
      %32 = arith.maximumf %30, %31 : vector<128x1xf32>
      %33 = tpu.reciprocal %32 : vector<128x1xf32> -> vector<128x1xf32>
      %c0_25 = arith.constant 0 : index
      %c0_26 = arith.constant 0 : index
      %34 = vector.load %arg6[%c0_25, %c0_26] : memref<128x128xf32, #tpu.memory_space<vmem>>, vector<128x128xf32>
      %c0_27 = arith.constant 0 : index
      %c0_28 = arith.constant 0 : index
      %35 = vector.load %arg7[%c0_27, %c0_28] : memref<128x128xf32, #tpu.memory_space<vmem>>, vector<128x128xf32>
      %36 = vector.broadcast %33 : vector<128x1xf32> to vector<128x128xf32>
      %37 = arith.mulf %35, %36 : vector<128x128xf32>
      %38 = arith.addf %34, %37 : vector<128x128xf32>
      %c0_29 = arith.constant 0 : index
      %c0_30 = arith.constant 0 : index
      %39 = vector.load %arg6[%c0_29, %c0_30] : memref<128x128xf32, #tpu.memory_space<vmem>>, vector<128x128xf32>
      tpu.vector_store %arg6[%c0_29, %c0_30], %38 {strides = array<i32>} : memref<128x128xf32, #tpu.memory_space<vmem>>, vector<128x128xf32>,
    } else {
    }
    %c2_i32 = arith.constant 2 : i32
    %25 = arith.cmpi eq, %arg1, %c2_i32 : i32
    %c0_i32_20 = arith.constant 0 : i32
    %26 = arith.cmpi eq, %arg2, %c0_i32_20 : i32
    %27 = arith.andi %25, %26 : i1
    %28 = arith.extui %27 : i1 to i32
    %c0_i32_21 = arith.constant 0 : i32
    %29 = arith.cmpi ne, %28, %c0_i32_21 : i32
    scf.if %29 {
      %c0_22 = arith.constant 0 : index
      %c0_23 = arith.constant 0 : index
      %30 = vector.load %arg6[%c0_22, %c0_23] : memref<128x128xf32, #tpu.memory_space<vmem>>, vector<128x128xf32>
      %c0_24 = arith.constant 0 : index
      %c0_25 = arith.constant 0 : index
      %31 = vector.load %arg5[%c0_24, %c0_25] : memref<1x128xf32, #tpu.memory_space<vmem>>, vector<1x128xf32>
      %32 = vector.broadcast %31 : vector<1x128xf32> to vector<128x128xf32>
      %33 = arith.addf %30, %32 : vector<128x128xf32>
      %cst_26 = arith.constant 0.000000e+00 : f32
      %34 = vector.broadcast %cst_26 : f32 to vector<128x128xf32>
      %35 = arith.cmpf oge, %33, %34 : vector<128x128xf32>
      %cst_27 = arith.constant 0.00999999977 : f32
      %36 = vector.broadcast %cst_27 : f32 to vector<128x128xf32>
      %37 = arith.mulf %36, %33 : vector<128x128xf32>
      %38 = arith.select %35, %33, %37 : vector<128x128xi1>, vector<128x128xf32>
      %c0_28 = arith.constant 0 : index
      %c0_29 = arith.constant 0 : index
      %39 = vector.load %arg6[%c0_28, %c0_29] : memref<128x128xf32, #tpu.memory_space<vmem>>, vector<128x128xf32>
      tpu.vector_store %arg6[%c0_28, %c0_29], %38 {strides = array<i32>} : memref<128x128xf32, #tpu.memory_space<vmem>>, vector<128x128xf32>,
    } else {
    }
    return
  }
  func.func @transform_0(%arg0: i32, %arg1: i32, %arg2: i32) -> (i32, i32, i32) {
    %c0_i32 = arith.constant 0 : i32
    return %arg1, %arg0, %arg2 : i32, i32, i32
  }
  func.func @transform_1(%arg0: i32, %arg1: i32, %arg2: i32) -> (i32, i32, i32) {
    %c0_i32 = arith.constant 0 : i32
    %c0_i32_0 = arith.constant 0 : i32
    return %arg1, %arg2, %c0_i32 : i32, i32, i32
  }
  func.func @transform_2(%arg0: i32, %arg1: i32, %arg2: i32) -> (i32, i32) {
    %c0_i32 = arith.constant 0 : i32
    %c0_i32_0 = arith.constant 0 : i32
    %c0_i32_1 = arith.constant 0 : i32
    return %c0_i32, %c0_i32_0 : i32, i32
  }
  func.func @transform_3(%arg0: i32, %arg1: i32, %arg2: i32) -> (i32, i32) {
    %c0_i32 = arith.constant 0 : i32
    %c0_i32_0 = arith.constant 0 : i32
    return %arg0, %c0_i32 : i32, i32
  }
}

module attributes {stable_mosaic.version = 11 : i64} {
  func.func @_rgcn_kernel(%arg0: i32, %arg1: i32, %arg2: i32, %arg3: memref<1x128x128xbf16, #tpu.memory_space<vmem>>, %arg4: memref<1x128x128xf32, #tpu.memory_space<vmem>>, %arg5: memref<1x128xf32, #tpu.memory_space<vmem>>, %arg6: memref<128x128xf32, #tpu.memory_space<vmem>>, %arg7: memref<128x128xf32, #tpu.memory_space<vmem>>, %arg8: memref<128x1xf32, #tpu.memory_space<vmem>>) attributes {dimension_semantics = [#tpu.dimension_semantics<parallel>, #tpu.dimension_semantics<arbitrary>, #tpu.dimension_semantics<arbitrary>], iteration_bounds = array<i64: 1, 3, 1>, scalar_prefetch = 0 : i64, scratch_operands = 2 : i64, tpu.core_type = #tpu.core_type<tc>, window_params = [{transform_indices = @transform_0, window_bounds = array<i64: 1, 128, 128>}, {transform_indices = @transform_1, window_bounds = array<i64: 1, 128, 128>}, {pipeline_mode = #tpu.pipeline_mode<synchronous>, transform_indices = @transform_2, window_bounds = array<i64: 1, 128>}, {transform_indices = @transform_3, window_bounds = array<i64: 128, 128>}]} {
    %c0_i32 = arith.constant 0 : i32
    %0 = arith.cmpi eq, %arg1, %c0_i32 : i32
    %c0_i32_0 = arith.constant 0 : i32
    %1 = arith.cmpi eq, %arg2, %c0_i32_0 : i32
    %2 = arith.andi %0, %1 : i1
    %3 = arith.extui %2 : i1 to i32
    %c0_i32_1 = arith.constant 0 : i32
    %4 = arith.cmpi ne, %3, %c0_i32_1 : i32
    scf.if %4 {
      %cst_22 = arith.constant 0.000000e+00 : f32
      %30 = vector.broadcast %cst_22 : f32 to vector<128x128xf32>
      %c0_23 = arith.constant 0 : index
      %c0_24 = arith.constant 0 : index
      %31 = vector.load %arg6[%c0_23, %c0_24] : memref<128x128xf32, #tpu.memory_space<vmem>>, vector<128x128xf32>
      tpu.vector_store %arg6[%c0_23, %c0_24], %30 {strides = array<i32>} : memref<128x128xf32, #tpu.memory_space<vmem>>, vector<128x128xf32>,
    } else {
    }
    %c0_i32_2 = arith.constant 0 : i32
    %5 = arith.cmpi eq, %arg2, %c0_i32_2 : i32
    %6 = arith.extui %5 : i1 to i32
    %c0_i32_3 = arith.constant 0 : i32
    %7 = arith.cmpi ne, %6, %c0_i32_3 : i32
    scf.if %7 {
      %cst_22 = arith.constant 0.000000e+00 : f32
      %30 = vector.broadcast %cst_22 : f32 to vector<128x128xf32>
      %c0_23 = arith.constant 0 : index
      %c0_24 = arith.constant 0 : index
      %31 = vector.load %arg7[%c0_23, %c0_24] : memref<128x128xf32, #tpu.memory_space<vmem>>, vector<128x128xf32>
      tpu.vector_store %arg7[%c0_23, %c0_24], %30 {strides = array<i32>} : memref<128x128xf32, #tpu.memory_space<vmem>>, vector<128x128xf32>,
      %cst_25 = arith.constant 0.000000e+00 : f32
      %32 = vector.broadcast %cst_25 : f32 to vector<128x1xf32>
      %c0_26 = arith.constant 0 : index
      %c0_27 = arith.constant 0 : index
      %33 = vector.load %arg8[%c0_26, %c0_27] : memref<128x1xf32, #tpu.memory_space<vmem>>, vector<128x1xf32>
      tpu.vector_store %arg8[%c0_26, %c0_27], %32 {strides = array<i32>} : memref<128x1xf32, #tpu.memory_space<vmem>>, vector<128x1xf32>,
    } else {
    }
    %c0 = arith.constant 0 : index
    %c0_4 = arith.constant 0 : index
    %c0_5 = arith.constant 0 : index
    %8 = vector.load %arg3[%c0, %c0_4, %c0_5] : memref<1x128x128xbf16, #tpu.memory_space<vmem>>, vector<1x128x128xbf16>
    %9 = vector.shape_cast %8 : vector<1x128x128xbf16> to vector<128x128xbf16>
    %10 = arith.extf %9 : vector<128x128xbf16> to vector<128x128xf32>
    %c0_6 = arith.constant 0 : index
    %c0_7 = arith.constant 0 : index
    %11 = vector.load %arg7[%c0_6, %c0_7] : memref<128x128xf32, #tpu.memory_space<vmem>>, vector<128x128xf32>
    %c0_8 = arith.constant 0 : index
    %c0_9 = arith.constant 0 : index
    %c0_10 = arith.constant 0 : index
    %12 = vector.load %arg4[%c0_8, %c0_9, %c0_10] : memref<1x128x128xf32, #tpu.memory_space<vmem>>, vector<1x128x128xf32>
    %13 = vector.shape_cast %12 : vector<1x128x128xf32> to vector<128x128xf32>
    %cst = arith.constant dense<0.000000e+00> : vector<128x128xf32>
    %14 = tpu.matmul %10, %13, %cst {dimension_numbers = #tpu.dot_dimension_numbers<[1], [0], [0], [1], [0, 0, 1, 1], [], []>} : vector<128x128xf32>, vector<128x128xf32>, vector<128x128xf32> -> vector<128x128xf32>
    %15 = arith.addf %11, %14 : vector<128x128xf32>
    %c0_11 = arith.constant 0 : index
    %c0_12 = arith.constant 0 : index
    %16 = vector.load %arg7[%c0_11, %c0_12] : memref<128x128xf32, #tpu.memory_space<vmem>>, vector<128x128xf32>
    tpu.vector_store %arg7[%c0_11, %c0_12], %15 {strides = array<i32>} : memref<128x128xf32, #tpu.memory_space<vmem>>, vector<128x128xf32>,
    %c0_13 = arith.constant 0 : index
    %c0_14 = arith.constant 0 : index
    %17 = vector.load %arg8[%c0_13, %c0_14] : memref<128x1xf32, #tpu.memory_space<vmem>>, vector<128x1xf32>
    %cst_15 = arith.constant dense<0.000000e+00> : vector<128xf32>
    %18 = vector.multi_reduction <add>, %10, %cst_15 [1] : vector<128x128xf32> to vector<128xf32>
    %19 = vector.shape_cast %18 : vector<128xf32> to vector<128x1xf32>
    %20 = arith.addf %17, %19 : vector<128x1xf32>
    %c0_16 = arith.constant 0 : index
    %c0_17 = arith.constant 0 : index
    %21 = vector.load %arg8[%c0_16, %c0_17] : memref<128x1xf32, #tpu.memory_space<vmem>>, vector<128x1xf32>
    tpu.vector_store %arg8[%c0_16, %c0_17], %20 {strides = array<i32>} : memref<128x1xf32, #tpu.memory_space<vmem>>, vector<128x1xf32>,
    %c0_i32_18 = arith.constant 0 : i32
    %22 = arith.cmpi eq, %arg2, %c0_i32_18 : i32
    %23 = arith.extui %22 : i1 to i32
    %c0_i32_19 = arith.constant 0 : i32
    %24 = arith.cmpi ne, %23, %c0_i32_19 : i32
    scf.if %24 {
      %c0_22 = arith.constant 0 : index
      %c0_23 = arith.constant 0 : index
      %30 = vector.load %arg8[%c0_22, %c0_23] : memref<128x1xf32, #tpu.memory_space<vmem>>, vector<128x1xf32>
      %cst_24 = arith.constant 1.000000e+00 : f32
      %31 = vector.broadcast %cst_24 : f32 to vector<128x1xf32>
      %32 = arith.maximumf %30, %31 : vector<128x1xf32>
      %33 = tpu.reciprocal %32 : vector<128x1xf32> -> vector<128x1xf32>
      %c0_25 = arith.constant 0 : index
      %c0_26 = arith.constant 0 : index
      %34 = vector.load %arg6[%c0_25, %c0_26] : memref<128x128xf32, #tpu.memory_space<vmem>>, vector<128x128xf32>
      %c0_27 = arith.constant 0 : index
      %c0_28 = arith.constant 0 : index
      %35 = vector.load %arg7[%c0_27, %c0_28] : memref<128x128xf32, #tpu.memory_space<vmem>>, vector<128x128xf32>
      %36 = vector.broadcast %33 : vector<128x1xf32> to vector<128x128xf32>
      %37 = arith.mulf %35, %36 : vector<128x128xf32>
      %38 = arith.addf %34, %37 : vector<128x128xf32>
      %c0_29 = arith.constant 0 : index
      %c0_30 = arith.constant 0 : index
      %39 = vector.load %arg6[%c0_29, %c0_30] : memref<128x128xf32, #tpu.memory_space<vmem>>, vector<128x128xf32>
      tpu.vector_store %arg6[%c0_29, %c0_30], %38 {strides = array<i32>} : memref<128x128xf32, #tpu.memory_space<vmem>>, vector<128x128xf32>,
    } else {
    }
    %c2_i32 = arith.constant 2 : i32
    %25 = arith.cmpi eq, %arg1, %c2_i32 : i32
    %c0_i32_20 = arith.constant 0 : i32
    %26 = arith.cmpi eq, %arg2, %c0_i32_20 : i32
    %27 = arith.andi %25, %26 : i1
    %28 = arith.extui %27 : i1 to i32
    %c0_i32_21 = arith.constant 0 : i32
    %29 = arith.cmpi ne, %28, %c0_i32_21 : i32
    scf.if %29 {
      %c0_22 = arith.constant 0 : index
      %c0_23 = arith.constant 0 : index
      %30 = vector.load %arg6[%c0_22, %c0_23] : memref<128x128xf32, #tpu.memory_space<vmem>>, vector<128x128xf32>
      %c0_24 = arith.constant 0 : index
      %c0_25 = arith.constant 0 : index
      %31 = vector.load %arg5[%c0_24, %c0_25] : memref<1x128xf32, #tpu.memory_space<vmem>>, vector<1x128xf32>
      %32 = vector.broadcast %31 : vector<1x128xf32> to vector<128x128xf32>
      %33 = arith.addf %30, %32 : vector<128x128xf32>
      %c0_26 = arith.constant 0 : index
      %c0_27 = arith.constant 0 : index
      %34 = vector.load %arg6[%c0_26, %c0_27] : memref<128x128xf32, #tpu.memory_space<vmem>>, vector<128x128xf32>
      tpu.vector_store %arg6[%c0_26, %c0_27], %33 {strides = array<i32>} : memref<128x128xf32, #tpu.memory_space<vmem>>, vector<128x128xf32>,
    } else {
    }
    return
  }
  func.func @transform_0(%arg0: i32, %arg1: i32, %arg2: i32) -> (i32, i32, i32) {
    %c0_i32 = arith.constant 0 : i32
    return %arg1, %arg0, %arg2 : i32, i32, i32
  }
  func.func @transform_1(%arg0: i32, %arg1: i32, %arg2: i32) -> (i32, i32, i32) {
    %c0_i32 = arith.constant 0 : i32
    %c0_i32_0 = arith.constant 0 : i32
    return %arg1, %arg2, %c0_i32 : i32, i32, i32
  }
  func.func @transform_2(%arg0: i32, %arg1: i32, %arg2: i32) -> (i32, i32) {
    %c0_i32 = arith.constant 0 : i32
    %c0_i32_0 = arith.constant 0 : i32
    %c0_i32_1 = arith.constant 0 : i32
    return %c0_i32, %c0_i32_0 : i32, i32
  }
  func.func @transform_3(%arg0: i32, %arg1: i32, %arg2: i32) -> (i32, i32) {
    %c0_i32 = arith.constant 0 : i32
    %c0_i32_0 = arith.constant 0 : i32
    return %arg0, %c0_i32 : i32, i32
  }
}

module attributes {stable_mosaic.version = 11 : i64} {
  func.func @_edge_dot_kernel(%arg0: i32, %arg1: memref<48x128xf32, #tpu.memory_space<vmem>>, %arg2: memref<48x128xf32, #tpu.memory_space<vmem>>, %arg3: memref<48x1xf32, #tpu.memory_space<vmem>>) attributes {dimension_semantics = [#tpu.dimension_semantics<parallel>], iteration_bounds = array<i64: 1>, scalar_prefetch = 0 : i64, scratch_operands = 0 : i64, tpu.core_type = #tpu.core_type<tc>, window_params = [{transform_indices = @transform_0, window_bounds = array<i64: 48, 128>}, {transform_indices = @transform_1, window_bounds = array<i64: 48, 128>}, {transform_indices = @transform_2, window_bounds = array<i64: 48, 1>}]} {
    %c0 = arith.constant 0 : index
    %c0_0 = arith.constant 0 : index
    %0 = vector.load %arg1[%c0, %c0_0] : memref<48x128xf32, #tpu.memory_space<vmem>>, vector<48x128xf32>
    %c0_1 = arith.constant 0 : index
    %c0_2 = arith.constant 0 : index
    %1 = vector.load %arg2[%c0_1, %c0_2] : memref<48x128xf32, #tpu.memory_space<vmem>>, vector<48x128xf32>
    %2 = arith.mulf %0, %1 : vector<48x128xf32>
    %cst = arith.constant dense<0.000000e+00> : vector<48xf32>
    %3 = vector.multi_reduction <add>, %2, %cst [1] : vector<48x128xf32> to vector<48xf32>
    %4 = vector.shape_cast %3 : vector<48xf32> to vector<48x1xf32>
    %c0_3 = arith.constant 0 : index
    %c0_4 = arith.constant 0 : index
    %5 = vector.load %arg3[%c0_3, %c0_4] : memref<48x1xf32, #tpu.memory_space<vmem>>, vector<48x1xf32>
    tpu.vector_store %arg3[%c0_3, %c0_4], %4 {strides = array<i32>} : memref<48x1xf32, #tpu.memory_space<vmem>>, vector<48x1xf32>,
    return
  }
  func.func @transform_0(%arg0: i32) -> (i32, i32) {
    %c0_i32 = arith.constant 0 : i32
    %c0_i32_0 = arith.constant 0 : i32
    return %arg0, %c0_i32 : i32, i32
  }
  func.func @transform_1(%arg0: i32) -> (i32, i32) {
    %c0_i32 = arith.constant 0 : i32
    %c0_i32_0 = arith.constant 0 : i32
    return %arg0, %c0_i32 : i32, i32
  }
  func.func @transform_2(%arg0: i32) -> (i32, i32) {
    %c0_i32 = arith.constant 0 : i32
    %c0_i32_0 = arith.constant 0 : i32
    return %arg0, %c0_i32 : i32, i32
  }
}

</mosaic_0001>

<bundles_post_ra>
// kernel: model_forward.5
= control target key start
LH: loop header
LB: loop body
LE: loop exit
PB: predicated region body
PF: predicated region fallthrough
CT: control target
= control target key end

     0   :  { %vm41_vm0 = vcmask 7168   ;;  %s121_s0 = inlined_call_operand.vmem [shape: f32[48,128], index: 0, kind: input, shape index: {}]   ;;  %s122_s1 = inlined_call_operand.vmem [shape: f32[48,128], index: 1, kind: input, shape index: {}]   ;;  %s123_s2 = inlined_call_operand.vmem [shape: f32[48,1], index: 2, kind: output, shape index: {}]  }
   0x1   :  { %v15_v0 = vld [vmem:[%s121_s0 + $0x20] sm:$0xff]  ;;  %v13_v2 = vld [vmem:[%s121_s0 + $0x10] sm:$0xff]  ;;  %v16_v9 = vld [vmem:[%s121_s0 + $0x28] sm:$0xff] }
   0x2   :  { %v21_v1 = vld [vmem:[%s122_s1 + $0x20] sm:$0xff]  ;;  %v19_v4 = vld [vmem:[%s122_s1 + $0x10] sm:$0xff]  ;;  %v22_v10 = vld [vmem:[%s122_s1 + $0x28] sm:$0xff] }
   0x3   :  { %v27_v3 = vmul.f32 %v21_v1, %v15_v0  ;;  %v11_v5 = vld [vmem:[%s121_s0] sm:$0xff]  ;;  %v25_v7 = vmul.f32 %v19_v4, %v13_v2  ;;  %v14_v11 = vld [vmem:[%s121_s0 + $0x18] sm:$0xff]  ;;  %v12_v13 = vld [vmem:[%s121_s0 + $0x8] sm:$0xff]  ;;  %v28_v15 = vmul.f32 %v22_v10, %v16_v9 }
   0x4   :  { %v17_v6 = vld [vmem:[%s122_s1] sm:$0xff]  ;;  %v20_v12 = vld [vmem:[%s122_s1 + $0x18] sm:$0xff]  ;;  %v18_v14 = vld [vmem:[%s122_s1 + $0x8] sm:$0xff] }
   0x5   :  { %v23_v8 = vmul.f32 %v17_v6, %v11_v5  ;;  %37 = vadd.xlane.f32.xlu2 %v27_v3  ;;  %33 = vadd.xlane.f32.xlu1 %v25_v7  ;;  %v26_v16 = vmul.f32 %v20_v12, %v14_v11  ;;  %v24_v17 = vmul.f32 %v18_v14, %v12_v13 }
   0x7   :  { %29 = vadd.xlane.f32.xlu0 %v23_v8 }
   0xd   :  { %39 = vadd.xlane.f32.xlu2 %v28_v15  ;;  %35 = vadd.xlane.f32.xlu1 %v26_v16 }
   0xf   :  { %31 = vadd.xlane.f32.xlu0 %v24_v17 }
  0x78   :  { %v38_v18 = vpop.xlane.xlu2 %37  ;;  %v34_v19 = vpop.xlane.xlu1 %33 }
  0x79   :  { %46 = vst.msk [vmem:[%s123_s2 + $0x20] sm:$0xff] %vm41_vm0, %v38_v18 }
  0x7a   :  { %v30_v20 = vpop.xlane.xlu0 %29  ;;  %44 = vst.msk [vmem:[%s123_s2 + $0x10] sm:$0xff] %vm41_vm0, %v34_v19 }
  0x7b   :  { %42 = vst.msk [vmem:[%s123_s2] sm:$0xff] %vm41_vm0, %v30_v20 }
  0x80   :  { %v40_v21 = vpop.xlane.xlu2 %39  ;;  %v36_v22 = vpop.xlane.xlu1 %35 }
  0x81   :  { %47 = vst.msk [vmem:[%s123_s2 + $0x28] sm:$0xff] %vm41_vm0, %v40_v21 }
  0x82   :  { %v32_v23 = vpop.xlane.xlu0 %31  ;;  %45 = vst.msk [vmem:[%s123_s2 + $0x18] sm:$0xff] %vm41_vm0, %v36_v22 }
  0x83   :  { %43 = vst.msk [vmem:[%s123_s2 + $0x8] sm:$0xff] %vm41_vm0, %v32_v23 }

// kernel: model_forward.4
= control target key start
LH: loop header
LB: loop body
LE: loop exit
PB: predicated region body
PF: predicated region fallthrough
CT: control target
= control target key end

     0   :  { %s1337_s12 = smov 0   ;;  %s1339_s13 = smov 0   ;;  %s2042_s0 = inlined_call_operand.vmem [shape: bf16[3,128,128], index: 0, kind: input, shape index: {}]   ;;  %s2043_s1 = inlined_call_operand.vmem [shape: f32[3,128,128], index: 1, kind: input, shape index: {}]   ;;  %s2044_s2 = inlined_call_operand.vmem [shape: f32[1,128], index: 2, kind: input, shape index: {}]   ;;  %s2045_s3 = inlined_call_operand.vmem [shape: f32[128,128], index: 3, kind: output, shape index: {}]  }
   0x1   :  { %s1341_s14 = smov 0  }
   0x2 LB: > { %s28_s15 = sadd.s32 1, %s1308_s13  ;;  %p1125_p0 = scmp.ge.s32.totalorder %s1312_s14, 1  ;;  %s1312_s14 = sphi %s1341_s14, %s13_s14   ;;  %s1308_s13 = sphi %s1339_s13, %s2081_s13   ;;  %s1304_s12 = sphi %s1337_s12, %s2080_s12  }
   0x3   : > { %p30_p1 = scmp.ge.s32.totalorder %s28_s15, 3  ;;  %p185_p2 = scmp.lt.s32.totalorder %s1312_s14, 4 }
   0x5   : > { %s2083_s15 = smov (%p30_p1, %s28_s15), 0  ;;  %p186_p3 = pnand %p1125_p0, %p185_p2 }
   0x6   : > { %p226_p4 = scmp.lt.s32.totalorder (!%p186_p3), %s1304_s12, 2  ;;  %p254_p5 = scmp.eq.s32.totalorder (!%p186_p3), %s1304_s12, 0 }
   0x7   : > { %189 = sbr.rel (%p186_p3) target bundleno = 350 (0x15e), region = 32 }
   0xc   : > { %s227_s16 = scalar_select %p226_p4, %s1304_s12, 2  ;;  %v1314_v0 = vmov (%p254_p5), 0.0  }
   0xd   : > { %259 = sbr.rel (!%p254_p5) target bundleno = 29 (0x1d), region = 36  ;;  %260 = vst [vmem:[%s2045_s3] sm:$0xff] (%p254_p5), %v1314_v0 }
   0xe   : > { %s1136_s17 = sshll.u32 %s227_s16, 6  ;;  %s1137_s18 = sshll.u32 %s227_s16, 7  ;;  %261 = vst [vmem:[%s2045_s3 + $0x8] sm:$0xff] (%p254_p5), %v1314_v0 }
   0xf   : > { %s1363_s21 = scalar_lea.vmem %s2042_s0, %s1136_s17  ;;  %s1368_s24 = scalar_lea.vmem %s2043_s1, %s1137_s18  ;;  %262 = vst [vmem:[%s2045_s3 + $0x10] sm:$0xff] (%p254_p5), %v1314_v0 }
  0x10   : > { %263 = vst [vmem:[%s2045_s3 + $0x18] sm:$0xff] (%p254_p5), %v1314_v0 }
  0x11   : > { %264 = vst [vmem:[%s2045_s3 + $0x20] sm:$0xff] (%p254_p5), %v1314_v0 }
  0x12   : > { %265 = vst [vmem:[%s2045_s3 + $0x28] sm:$0xff] %v1314_v0 }
  0x13   : > { %266 = vst [vmem:[%s2045_s3 + $0x30] sm:$0xff] %v1314_v0 }
  0x14   : > { %267 = vst [vmem:[%s2045_s3 + $0x38] sm:$0xff] %v1314_v0 }
  0x15   : > { %268 = vst [vmem:[%s2045_s3 + $0x40] sm:$0xff] %v1314_v0 }
  0x16   : > { %269 = vst [vmem:[%s2045_s3 + $0x48] sm:$0xff] %v1314_v0 }
  0x17   : > { %270 = vst [vmem:[%s2045_s3 + $0x50] sm:$0xff] %v1314_v0 }
  0x18   : > { %271 = vst [vmem:[%s2045_s3 + $0x58] sm:$0xff] %v1314_v0 }
  0x19   : > { %272 = vst [vmem:[%s2045_s3 + $0x60] sm:$0xff] %v1314_v0 }
  0x1a   : > { %273 = vst [vmem:[%s2045_s3 + $0x68] sm:$0xff] %v1314_v0 }
  0x1b   : > { %274 = vst [vmem:[%s2045_s3 + $0x70] sm:$0xff] %v1314_v0 }
  0x1c   : > { %275 = vst [vmem:[%s2045_s3 + $0x78] sm:$0xff] %v1314_v0 }
  0x1d PF: > { %v1419_v1 = vld [vmem:[%s1363_s21 + $0x10] sm:$0xff]   ;;  %v1422_v2 = vld [vmem:[%s1363_s21] sm:$0xff]   ;;  %v1425_v3 = vld [vmem:[%s1363_s21 + $0x8] sm:$0xff]   ;;  %vm295_vm0 = vcmask 7168   ;;  %v1315_v41 = vmov 0.0   ;;  %v1316_v42 = vmov 0  }
  0x1e   : > { %v1150_v4 = vunpack.c.l.bf16 %v1419_v1  ;;  %v1142_v5 = vunpack.c.l.bf16 %v1422_v2  ;;  %v1146_v6 = vunpack.c.l.bf16 %v1425_v3  ;;  %v1151_v7 = vunpack.c.h.bf16 %v1419_v1  ;;  %v375_v10 = vld [vmem:[%s1368_s24 + $0x78] sm:$0xff]  ;;  %v374_v11 = vld [vmem:[%s1368_s24 + $0x70] sm:$0xff]  ;;  %v1446_v12 = vld [vmem:[%s1363_s21 + $0x20] sm:$0xff]   ;;  %300 = vst.msk [vmem:[#allocation3 + $0x20] sm:$0xff] %vm295_vm0, %v1315_v41  ;;  %1254 = vset.pattern.permute.xlu1 %v1316_v42  ;;  %1256 = vset.pattern.permute.xlu0 %v1316_v42  ;;  %p973_p6 = scmp.eq.s32.totalorder %s1304_s12, 2 }
  0x1f   : > { %v1143_v8 = vunpack.c.h.bf16 %v1422_v2  ;;  %v1147_v9 = vunpack.c.h.bf16 %v1425_v3  ;;  %v1451_v13 = vld [vmem:[%s1363_s21 + $0x18] sm:$0xff]   ;;  %376 = vmatpush.msra.mxu0 %v375_v10  ;;  %v373_v14 = vld [vmem:[%s1368_s24 + $0x68] sm:$0xff]  ;;  %1179 = vmatpush.msra.mxu1 %v375_v10  ;;  %v1158_v15 = vunpack.c.l.bf16 %v1446_v12  ;;  %v372_v17 = vld [vmem:[%s1368_s24 + $0x60] sm:$0xff]  ;;  %v1159_v24 = vunpack.c.h.bf16 %v1446_v12  ;;  %296 = vst.msk [vmem:[#allocation3] sm:$0xff] %vm295_vm0, %v1315_v41 }
  0x20   : > { %497 = vadd.xlane.f32.xlu2 %v1150_v4  ;;  %489 = vadd.xlane.f32.xlu0 %v1142_v5  ;;  %v1154_v16 = vunpack.c.l.bf16 %v1451_v13  ;;  %v1155_v18 = vunpack.c.h.bf16 %v1451_v13  ;;  %v371_v19 = vld [vmem:[%s1368_s24 + $0x58] sm:$0xff]  ;;  %v370_v20 = vld [vmem:[%s1368_s24 + $0x50] sm:$0xff]  ;;  %v1465_v21 = vld [vmem:[%s1363_s21 + $0x28] sm:$0xff]   ;;  %297 = vst.msk [vmem:[#allocation3 + $0x8] sm:$0xff] %vm295_vm0, %v1315_v41 }
  0x21   : > { %493 = vadd.xlane.f32.xlu1 %v1146_v6  ;;  %1180 = vmatpush.msra.mxu2 %v375_v10  ;;  %v369_v22 = vld [vmem:[%s1368_s24 + $0x48] sm:$0xff]  ;;  %v1163_v23 = vunpack.c.h.bf16 %v1465_v21  ;;  %v368_v25 = vld [vmem:[%s1368_s24 + $0x40] sm:$0xff]  ;;  %v1162_v26 = vunpack.c.l.bf16 %v1465_v21  ;;  %v367_v27 = vld [vmem:[%s1368_s24 + $0x38] sm:$0xff]  ;;  %298 = vst.msk [vmem:[#allocation3 + $0x10] sm:$0xff] %vm295_vm0, %v1315_v41 }
  0x22   : > { %377 = vmatpush.msra.mxu0 %v374_v11  ;;  %1181 = vmatpush.msra.mxu3 %v375_v10  ;;  %v366_v28 = vld [vmem:[%s1368_s24 + $0x30] sm:$0xff]  ;;  %v1481_v29 = vld [vmem:[%s1363_s21 + $0x38] sm:$0xff]   ;;  %v365_v31 = vld [vmem:[%s1368_s24 + $0x28] sm:$0xff]  ;;  %299 = vst.msk [vmem:[#allocation3 + $0x18] sm:$0xff] %vm295_vm0, %v1315_v41 }
  0x23   : > { %1182 = vmatpush.msra.mxu1 %v374_v11  ;;  %1183 = vmatpush.msra.mxu2 %v374_v11  ;;  %v1177_v30 = vld [vmem:[%s1363_s21 + $0x30] sm:$0xff]   ;;  %v1170_v32 = vunpack.c.l.bf16 %v1481_v29  ;;  %v364_v34 = vld [vmem:[%s1368_s24 + $0x20] sm:$0xff]  ;;  %v363_v36 = vld [vmem:[%s1368_s24 + $0x18] sm:$0xff]  ;;  %v1171_v39 = vunpack.c.h.bf16 %v1481_v29  ;;  %301 = vst.msk [vmem:[#allocation3 + $0x28] sm:$0xff] %vm295_vm0, %v1315_v41 }
  0x24   : > { %378 = vmatpush.msra.mxu0 %v373_v14  ;;  %1184 = vmatpush.msra.mxu3 %v374_v11  ;;  %v1166_v33 = vunpack.c.l.bf16 %v1177_v30  ;;  %v1167_v35 = vunpack.c.h.bf16 %v1177_v30  ;;  %v362_v37 = vld [vmem:[%s1368_s24 + $0x10] sm:$0xff]  ;;  %v361_v38 = vld [vmem:[%s1368_s24 + $0x8] sm:$0xff]  ;;  %v360_v40 = vld [vmem:[%s1368_s24] sm:$0xff]  ;;  %302 = vst.msk [vmem:[#allocation3 + $0x30] sm:$0xff] %vm295_vm0, %v1315_v41 }
  0x25   : > { %1185 = vmatpush.msra.mxu1 %v373_v14  ;;  %1186 = vmatpush.msra.mxu2 %v373_v14  ;;  %303 = vst.msk [vmem:[#allocation3 + $0x38] sm:$0xff] %vm295_vm0, %v1315_v41  ;;  %v477_v43 = vld [vmem:[#allocation3 + $0x20] sm:$0xff] }
  0x26   : > { %379 = vmatpush.msra.mxu0 %v372_v17  ;;  %1187 = vmatpush.msra.mxu3 %v373_v14  ;;  %304 = vst.msk [vmem:[#allocation3 + $0x40] sm:$0xff] %vm295_vm0, %v1315_v41  ;;  %v473_v44 = vld [vmem:[#allocation3] sm:$0xff] }
  0x27   : > { %1188 = vmatpush.msra.mxu1 %v372_v17  ;;  %1189 = vmatpush.msra.mxu2 %v372_v17  ;;  %305 = vst.msk [vmem:[#allocation3 + $0x48] sm:$0xff] %vm295_vm0, %v1315_v41  ;;  %v474_v53 = vld [vmem:[#allocation3 + $0x8] sm:$0xff] }
  0x28   : > { %499 = vadd.xlane.f32.xlu2 %v1151_v7  ;;  %491 = vadd.xlane.f32.xlu0 %v1143_v8  ;;  %306 = vst.msk [vmem:[#allocation3 + $0x50] sm:$0xff] %vm295_vm0, %v1315_v41  ;;  %v475_v45 = vld [vmem:[#allocation3 + $0x10] sm:$0xff] }
  0x29   : > { %495 = vadd.xlane.f32.xlu1 %v1147_v9  ;;  %380 = vmatpush.msra.mxu0 %v371_v19  ;;  %307 = vst.msk [vmem:[#allocation3 + $0x58] sm:$0xff] %vm295_vm0, %v1315_v41  ;;  %v476_v54 = vld [vmem:[#allocation3 + $0x18] sm:$0xff] }
  0x2a   : > { %1190 = vmatpush.msra.mxu3 %v372_v17  ;;  %1191 = vmatpush.msra.mxu1 %v371_v19  ;;  %308 = vst.msk [vmem:[#allocation3 + $0x60] sm:$0xff] %vm295_vm0, %v1315_v41  ;;  %v478_v52 = vld [vmem:[#allocation3 + $0x28] sm:$0xff] }
  0x2b   : > { %381 = vmatpush.msra.mxu0 %v370_v20  ;;  %1192 = vmatpush.msra.mxu2 %v371_v19  ;;  %309 = vst.msk [vmem:[#allocation3 + $0x68] sm:$0xff] %vm295_vm0, %v1315_v41 }
  0x2c   : > { %1193 = vmatpush.msra.mxu3 %v371_v19  ;;  %1194 = vmatpush.msra.mxu1 %v370_v20  ;;  %310 = vst.msk [vmem:[#allocation3 + $0x70] sm:$0xff] %vm295_vm0, %v1315_v41 }
  0x2d   : > { %382 = vmatpush.msra.mxu0 %v369_v22  ;;  %1195 = vmatpush.msra.mxu2 %v370_v20  ;;  %311 = vst.msk [vmem:[#allocation3 + $0x78] sm:$0xff] %vm295_vm0, %v1315_v41  ;;  %v481_v3 = vld [vmem:[#allocation3 + $0x40] sm:$0xff] }
  0x2e   : > { %1196 = vmatpush.msra.mxu3 %v370_v20  ;;  %1197 = vmatpush.msra.mxu1 %v369_v22 }
  0x2f   : > { %383 = vmatpush.msra.mxu0 %v368_v25  ;;  %1198 = vmatpush.msra.mxu2 %v369_v22 }
  0x30   : > { %505 = vadd.xlane.f32.xlu2 %v1158_v15  ;;  %501 = vadd.xlane.f32.xlu0 %v1154_v16 }
  0x31   : > { %503 = vadd.xlane.f32.xlu1 %v1155_v18  ;;  %384 = vmatpush.msra.mxu0 %v367_v27 }
  0x32   : > { %1199 = vmatpush.msra.mxu3 %v369_v22  ;;  %1200 = vmatpush.msra.mxu1 %v368_v25 }
  0x33   : > { %385 = vmatpush.msra.mxu0 %v366_v28  ;;  %1201 = vmatpush.msra.mxu2 %v368_v25 }
  0x34   : > { %1202 = vmatpush.msra.mxu3 %v368_v25  ;;  %1203 = vmatpush.msra.mxu1 %v367_v27 }
  0x35   : > { %386 = vmatpush.msra.mxu0 %v365_v31  ;;  %1204 = vmatpush.msra.mxu2 %v367_v27 }
  0x36   : > { %1205 = vmatpush.msra.mxu3 %v367_v27  ;;  %1206 = vmatpush.msra.mxu1 %v366_v28  ;;  %v482_v27 = vld [vmem:[#allocation3 + $0x48] sm:$0xff] }
  0x37   : > { %387 = vmatpush.msra.mxu0 %v364_v34  ;;  %1207 = vmatpush.msra.mxu2 %v366_v28 }
  0x38   : > { %511 = vadd.xlane.f32.xlu2 %v1163_v23  ;;  %507 = vadd.xlane.f32.xlu0 %v1159_v24 }
  0x39   : > { %509 = vadd.xlane.f32.xlu1 %v1162_v26  ;;  %388 = vmatpush.msra.mxu0 %v363_v36 }
  0x3a   : > { %1208 = vmatpush.msra.mxu3 %v366_v28  ;;  %1209 = vmatpush.msra.mxu1 %v365_v31 }
  0x3b   : > { %389 = vmatpush.msra.mxu0 %v362_v37  ;;  %1210 = vmatpush.msra.mxu2 %v365_v31 }
  0x3c   : > { %1211 = vmatpush.msra.mxu3 %v365_v31  ;;  %1212 = vmatpush.msra.mxu1 %v364_v34 }
  0x3d   : > { %390 = vmatpush.msra.mxu0 %v361_v38  ;;  %1213 = vmatpush.msra.mxu2 %v364_v34 }
  0x3e   : > { %1214 = vmatpush.msra.mxu3 %v364_v34  ;;  %1215 = vmatpush.msra.mxu1 %v363_v36  ;;  %v483_v34 = vld [vmem:[#allocation3 + $0x50] sm:$0xff] }
  0x3f   : > { %391 = vmatpush.msra.mxu0 %v360_v40  ;;  %1216 = vmatpush.msra.mxu2 %v363_v36 }
  0x40   : > { %517 = vadd.xlane.f32.xlu2 %v1170_v32  ;;  %513 = vadd.xlane.f32.xlu0 %v1166_v33 }
  0x41   : > { %515 = vadd.xlane.f32.xlu1 %v1167_v35  ;;  %392 = vmatmul.f32.vlgmr.msra.gmra.mxu0 %v1142_v5  ;;  %v480_v5 = vld [vmem:[#allocation3 + $0x38] sm:$0xff] }
  0x42   : > { %1217 = vmatpush.msra.mxu3 %v363_v36  ;;  %1218 = vmatpush.msra.mxu1 %v362_v37 }
  0x43   : > { %1219 = vmatpush.msra.mxu2 %v362_v37  ;;  %1255 = vset.pattern.permute.xlu2 %v1316_v42 }
  0x44   : > { %1220 = vmatpush.msra.mxu3 %v362_v37  ;;  %1221 = vmatpush.msra.mxu1 %v361_v38 }
  0x45   : > { %1222 = vmatpush.msra.mxu2 %v361_v38 }
  0x46   : > { %1223 = vmatpush.msra.mxu3 %v361_v38  ;;  %1224 = vmatpush.msra.mxu1 %v360_v40 }
  0x47   : > { %1225 = vmatpush.msra.mxu2 %v360_v40  ;;  %404 = vmatmul.f32.vlgmr.msra.gmra.mxu1 %v1150_v4  ;;  %v479_v4 = vld [vmem:[#allocation3 + $0x30] sm:$0xff] }
  0x48   : > { %519 = vadd.xlane.f32.xlu0 %v1171_v39  ;;  %416 = vmatmul.f32.vlgmr.msra.gmra.mxu2 %v1158_v15 }
  0x49   : > { %395 = vmatmul.f32.gmra.mxu0 %v1143_v8  ;;  %1226 = vmatpush.msra.mxu3 %v360_v40 }
  0x4a   : > { %428 = vmatmul.f32.vlgmr.msra.gmra.mxu3 %v1166_v33 }
  0x4f   : > { %407 = vmatmul.f32.gmra.mxu1 %v1151_v7 }
  0x50   : > { %419 = vmatmul.f32.gmra.mxu2 %v1159_v24 }
  0x51   : > { %398 = vmatmul.f32.gmra.mxu0 %v1146_v6 }
  0x52   : > { %431 = vmatmul.f32.gmra.mxu3 %v1167_v35 }
  0x57   : > { %410 = vmatmul.f32.gmra.mxu1 %v1154_v16 }
  0x58   : > { %422 = vmatmul.f32.gmra.mxu2 %v1162_v26  ;;  %v484_v26 = vld [vmem:[#allocation3 + $0x58] sm:$0xff] }
  0x59   : > { %401 = vmatmul.f32.gmra.mxu0 %v1147_v9 }
  0x5a   : > { %434 = vmatmul.f32.gmra.mxu3 %v1170_v32 }
  0x5f   : > { %413 = vmatmul.f32.gmra.mxu1 %v1155_v18 }
  0x60   : > { %425 = vmatmul.f32.gmra.mxu2 %v1163_v23 }
  0x62   : > { %437 = vmatmul.f32.gmra.mxu3 %v1171_v39 }
  0x93   : > { %v498_v46 = vpop.xlane.xlu2 %497  ;;  %v490_v47 = vpop.xlane.xlu0 %489 }
  0x94   : > { %v525_v48 = vadd.f32 %v498_v46, %v477_v43  ;;  %v521_v49 = vadd.f32 %v490_v47, %v473_v44  ;;  %v494_v50 = vpop.xlane.xlu1 %493 }
  0x95   : > { %v523_v51 = vadd.f32 %v494_v50, %v475_v45 }
  0x96   : > { %542 = vst.msk [vmem:[#allocation3 + $0x20] sm:$0xff] %vm295_vm0, %v525_v48 }
  0x97   : > { %538 = vst.msk [vmem:[#allocation3] sm:$0xff] %vm295_vm0, %v521_v49 }
  0x98   : > { %540 = vst.msk [vmem:[#allocation3 + $0x10] sm:$0xff] %vm295_vm0, %v523_v51 }
  0x9b   : > { %v500_v55 = vpop.xlane.xlu2 %499  ;;  %v492_v56 = vpop.xlane.xlu0 %491 }
  0x9c   : > { %v526_v57 = vadd.f32 %v500_v55, %v478_v52  ;;  %v522_v58 = vadd.f32 %v492_v56, %v474_v53  ;;  %v496_v59 = vpop.xlane.xlu1 %495 }
  0x9d   : > { %v524_v60 = vadd.f32 %v496_v59, %v476_v54  ;;  %v561_v61 = vld [vmem:[#allocation3 + $0x20] sm:$0xff] }
  0x9e   : > { %543 = vst.msk [vmem:[#allocation3 + $0x28] sm:$0xff] %vm295_vm0, %v526_v57  ;;  %v557_v62 = vld [vmem:[#allocation3] sm:$0xff]  ;;  %v1538_v63 = vmax.f32 %v561_v61, 1.0 }
  0x9f   : > { %539 = vst.msk [vmem:[#allocation3 + $0x8] sm:$0xff] %vm295_vm0, %v522_v58  ;;  %v1541_v0 = vmax.f32 %v557_v62, 1.0  ;;  %v559_v1 = vld [vmem:[#allocation3 + $0x10] sm:$0xff] }
  0xa0   : > { %541 = vst.msk [vmem:[#allocation3 + $0x18] sm:$0xff] %vm295_vm0, %v524_v60  ;;  %v1544_v2 = vmax.f32 %v559_v1, 1.0  ;;  %1257 = vrcp.f32 %v1538_v63  ;;  %vm650_vm2 = vweird.f32 %v1538_v63  ;;  %v654_v20 = vand.u32 2147483647, %v1538_v63  ;;  %v487_v1 = vld [vmem:[#allocation3 + $0x70] sm:$0xff] }
  0xa1   : > { %1259 = vrcp.f32 %v1541_v0  ;;  %v598_v14 = vand.u32 2147483647, %v1541_v0  ;;  %vm594_vm1 = vweird.f32 %v1541_v0  ;;  %v600_v24 = vand.u32 2147483648, %v1541_v0 }
  0xa2   : > { %1261 = vrcp.f32 %v1544_v2  ;;  %vm622_vm3 = vweird.f32 %v1544_v2  ;;  %v626_v29 = vand.u32 2147483647, %v1544_v2  ;;  %v628_v32 = vand.u32 2147483648, %v1544_v2 }
  0xa3   : > { %v506_v6 = vpop.xlane.xlu2 %505  ;;  %v502_v7 = vpop.xlane.xlu0 %501  ;;  %vm1576_vm4 = vcmp.eq.f32.partialorder %v598_v14, 8.507059e+37  ;;  %v656_v38 = vand.u32 2147483648, %v1538_v63  ;;  %v601_v43 = vor.u32 1.1754944e-38, %v600_v24  ;;  %vm1601_vm9 = vcmp.eq.f32.partialorder %v654_v20, 8.507059e+37 }
  0xa4   : > { %v529_v8 = vadd.f32 %v506_v6, %v481_v3  ;;  %v527_v9 = vadd.f32 %v502_v7, %v479_v4  ;;  %v504_v10 = vpop.xlane.xlu1 %503  ;;  %vm1597_vm8 = vcmp.eq.f32.partialorder %v626_v29, 8.507059e+37  ;;  %v629_v51 = vor.u32 1.1754944e-38, %v628_v32 }
  0xa5   : > { %v528_v11 = vadd.f32 %v504_v10, %v480_v5  ;;  %v562_v12 = vld [vmem:[#allocation3 + $0x28] sm:$0xff]  ;;  %v657_v61 = vor.u32 1.1754944e-38, %v656_v38 }
  0xa6   : > { %v1549_v13 = vpop.eup %1257  ;;  %546 = vst.msk [vmem:[#allocation3 + $0x40] sm:$0xff] %vm295_vm0, %v529_v8  ;;  %v558_v15 = vld [vmem:[#allocation3 + $0x8] sm:$0xff]  ;;  %v1553_v16 = vmax.f32 %v562_v12, 1.0 }
  0xa7   : > { %v1555_v17 = vpop.eup %1259  ;;  %544 = vst.msk [vmem:[#allocation3 + $0x30] sm:$0xff] %vm295_vm0, %v527_v9  ;;  %v1559_v18 = vmax.f32 %v558_v15, 1.0  ;;  %v646_v19 = vmul.f32 %v1549_v13, %v1538_v63  ;;  %v560_v21 = vld [vmem:[#allocation3 + $0x18] sm:$0xff]  ;;  %vm651_vm11 = vweird.f32 %v1549_v13  ;;  %v486_v9 = vld [vmem:[#allocation3 + $0x68] sm:$0xff] }
  0xa8   : > { %v1262_v22 = vpop.eup %1261  ;;  %v590_v23 = vmul.f32 %v1555_v17, %v1541_v0  ;;  %545 = vst.msk [vmem:[#allocation3 + $0x38] sm:$0xff] %vm295_vm0, %v528_v11  ;;  %v1569_v25 = vmax.f32 %v560_v21, 1.0  ;;  %1263 = vrcp.f32 %v1553_v16  ;;  %vm595_vm6 = vweird.f32 %v1555_v17  ;;  %vm1637_vm13 = vmor %vm650_vm2, %vm651_vm11 }
  0xa9   : > { %v618_v28 = vmul.f32 %v1262_v22, %v1544_v2  ;;  %1265 = vrcp.f32 %v1559_v18  ;;  %v647_v33 = vsub.f32 1.0, %v646_v19  ;;  %vm623_vm5 = vweird.f32 %v1262_v22  ;;  %vm596_vm10 = vmor %vm594_vm1, %vm595_vm6  ;;  %v485_v2 = vld [vmem:[#allocation3 + $0x60] sm:$0xff] }
  0xaa   : > { %v591_v30 = vsub.f32 1.0, %v590_v23  ;;  %1267 = vrcp.f32 %v1569_v25  ;;  %vm1593_vm7 = vmor %vm622_vm3, %vm623_vm5  ;;  %v612_v60 = vand.u32 2147483647, %v1559_v18  ;;  %vm608_vm12 = vweird.f32 %v1559_v18 }
  0xab   : > { %v512_v35 = vpop.xlane.xlu2 %511  ;;  %v508_v36 = vpop.xlane.xlu0 %507  ;;  %v619_v37 = vsub.f32 1.0, %v618_v28  ;;  %v648_v45 = vmul.f32 %v1549_v13, %v647_v33  ;;  %v614_v12 = vand.u32 2147483648, %v1559_v18  ;;  %vm636_vm15 = vweird.f32 %v1569_v25 }
  0xac   : > { %v532_v39 = vadd.f32 %v512_v35, %v484_v26  ;;  %v530_v40 = vadd.f32 %v508_v36, %v482_v27  ;;  %v592_v41 = vmul.f32 %v1555_v17, %v591_v30  ;;  %v510_v42 = vpop.xlane.xlu1 %509  ;;  %vm1650_vm1 = vcmp.eq.f32.partialorder %v612_v60, 8.507059e+37 }
  0xad   : > { %v620_v44 = vmul.f32 %v1262_v22, %v619_v37  ;;  %v531_v46 = vadd.f32 %v510_v42, %v483_v34  ;;  %v649_v56 = vadd.f32 %v1549_v13, %v648_v45  ;;  %v642_v27 = vand.u32 2147483648, %v1569_v25  ;;  %v565_v29 = vld [vmem:[#allocation3 + $0x40] sm:$0xff] }
  0xae   : > { %v1586_v47 = vpop.eup %1263  ;;  %549 = vst.msk [vmem:[#allocation3 + $0x58] sm:$0xff] %vm295_vm0, %v532_v39  ;;  %v593_v48 = vadd.f32 %v1555_v17, %v592_v41  ;;  %v563_v53 = vld [vmem:[#allocation3 + $0x30] sm:$0xff]  ;;  %v615_v31 = vor.u32 1.1754944e-38, %v614_v12  ;;  %v488_v39 = vld [vmem:[#allocation3 + $0x78] sm:$0xff]  ;;  %v1687_v42 = vmax.f32 %v565_v29, 1.0  ;;  %vm664_vm6 = vweird.f32 %v1553_v16 }
  0xaf   : > { %v1605_v54 = vpop.eup %1265  ;;  %547 = vst.msk [vmem:[#allocation3 + $0x48] sm:$0xff] %vm295_vm0, %v530_v40  ;;  %v621_v55 = vadd.f32 %v1262_v22, %v620_v44  ;;  %v1614_v57 = vmax.f32 %v563_v53, 1.0  ;;  %v660_v4 = vmul.f32 %v1586_v47, %v1553_v16  ;;  %v653_v14 = vsel %vm1637_vm13, %v1549_v13, %v649_v56 }
  0xb0   : > { %v597_v58 = vsel %vm596_vm10, %v1555_v17, %v593_v48  ;;  %v604_v59 = vmul.f32 %v1605_v54, %v1559_v18  ;;  %548 = vst.msk [vmem:[#allocation3 + $0x50] sm:$0xff] %vm295_vm0, %v531_v46  ;;  %v1621_v62 = vpop.eup %1267  ;;  %vm609_vm14 = vweird.f32 %v1605_v54  ;;  %v658_v32 = vsel %vm1601_vm9, %v657_v61, %v653_v14  ;;  %v564_v48 = vld [vmem:[#allocation3 + $0x38] sm:$0xff] }
  0xb1   : > { %v602_v0 = vsel %vm1576_vm4, %v601_v43, %v597_v58  ;;  %v625_v3 = vsel %vm1593_vm7, %v1262_v22, %v621_v55  ;;  %1269 = vrcp.f32 %v1614_v57  ;;  %v632_v8 = vmul.f32 %v1621_v62, %v1569_v25  ;;  %vm610_vm3 = vmor %vm608_vm12, %vm609_vm14 }
  0xb2   : > { %847 = vperm.xlu1 %1254, %v602_v0   ;;  %v630_v5 = vsel %vm1597_vm8, %v629_v51, %v625_v3  ;;  %v605_v6 = vsub.f32 1.0, %v604_v59  ;;  %v640_v22 = vand.u32 2147483647, %v1569_v25  ;;  %v661_v24 = vsub.f32 1.0, %v660_v4 }
  0xb3   : > { %v518_v10 = vpop.xlane.xlu2 %517  ;;  %v514_v11 = vpop.xlane.xlu0 %513  ;;  %857 = vperm.xlu0 %1256, %v630_v5   ;;  %v633_v19 = vsub.f32 1.0, %v632_v8  ;;  %vm637_vm2 = vweird.f32 %v1621_v62  ;;  %v682_v33 = vand.u32 2147483647, %v1614_v57  ;;  %v684_v41 = vand.u32 2147483648, %v1614_v57 }
  0xb4   : > { %v535_v63 = vadd.f32 %v518_v10, %v487_v1  ;;  %v533_v15 = vadd.f32 %v514_v11, %v485_v2  ;;  %v606_v17 = vmul.f32 %v1605_v54, %v605_v6  ;;  %v516_v20 = vpop.xlane.xlu1 %515  ;;  %v662_v38 = vmul.f32 %v1586_v47, %v661_v24  ;;  %vm1681_vm4 = vmor %vm636_vm15, %vm637_vm2 }
  0xb5   : > { %v534_v23 = vadd.f32 %v516_v20, %v486_v9  ;;  %v634_v26 = vmul.f32 %v1621_v62, %v633_v19  ;;  %vm1689_vm5 = vcmp.eq.f32.partialorder %v640_v22, 8.507059e+37  ;;  %v643_v44 = vor.u32 1.1754944e-38, %v642_v27  ;;  %v568_v53 = vld [vmem:[#allocation3 + $0x58] sm:$0xff] }
  0xb6   : > { %552 = vst.msk [vmem:[#allocation3 + $0x70] sm:$0xff] %vm295_vm0, %v535_v63  ;;  %v607_v13 = vadd.f32 %v1605_v54, %v606_v17  ;;  %v566_v28 = vld [vmem:[#allocation3 + $0x48] sm:$0xff]  ;;  %vm678_vm7 = vweird.f32 %v1614_v57  ;;  %vm665_vm9 = vweird.f32 %v1586_v47  ;;  %v663_v52 = vadd.f32 %v1586_v47, %v662_v38 }
  0xb7   : > { %v1270_v30 = vpop.eup %1269  ;;  %550 = vst.msk [vmem:[#allocation3 + $0x60] sm:$0xff] %vm295_vm0, %v533_v15  ;;  %v1668_v34 = vmax.f32 %v566_v28, 1.0  ;;  %v635_v36 = vadd.f32 %v1621_v62, %v634_v26  ;;  %vm1701_vm10 = vcmp.eq.f32.partialorder %v682_v33, 8.507059e+37  ;;  %v685_v55 = vor.u32 1.1754944e-38, %v684_v41  ;;  %vm1711_vm11 = vmor %vm664_vm6, %vm665_vm9  ;;  %v567_v8 = vld [vmem:[#allocation3 + $0x50] sm:$0xff] }
  0xb8   : > { %v611_v35 = vsel %vm610_vm3, %v1605_v54, %v607_v13  ;;  %v674_v37 = vmul.f32 %v1270_v30, %v1614_v57  ;;  %551 = vst.msk [vmem:[#allocation3 + $0x68] sm:$0xff] %vm295_vm0, %v534_v23  ;;  %vm679_vm8 = vweird.f32 %v1270_v30  ;;  %v670_v56 = vand.u32 2147483648, %v1553_v16 }
  0xb9   : > { %v616_v18 = vsel %vm1650_vm1, %v615_v31, %v611_v35  ;;  %1271 = vrcp.f32 %v1668_v34  ;;  %v724_v46 = vand.u32 2147483647, %v1668_v34  ;;  %v639_v50 = vsel %vm1681_vm4, %v1621_v62, %v635_v36 }
  0xba   : > { %852 = vperm.xlu2 %1255, %v616_v18   ;;  %867 = vperm.xlu1 %1254, %v658_v32   ;;  %v675_v45 = vsub.f32 1.0, %v674_v37  ;;  %1273 = vrcp.f32 %v1687_v42  ;;  %v726_v59 = vand.u32 2147483648, %v1668_v34  ;;  %v668_v61 = vand.u32 2147483647, %v1553_v16 }
  0xbb   : > { %v520_v25 = vpop.xlane.xlu0 %519  ;;  %v1716_v0 = vmax.f32 %v564_v48, 1.0  ;;  %v644_v2 = vsel %vm1689_vm5, %v643_v44, %v639_v50  ;;  %vm720_vm12 = vweird.f32 %v1668_v34  ;;  %v1726_v4 = vmax.f32 %v568_v53, 1.0 }
  0xbc   : > { %v536_v49 = vadd.f32 %v520_v25, %v488_v39  ;;  %v676_v51 = vmul.f32 %v1270_v30, %v675_v45  ;;  %vm1729_vm13 = vcmp.eq.f32.partialorder %v724_v46, 8.507059e+37  ;;  %v667_v7 = vsel %vm1711_vm11, %v1586_v47, %v663_v52 }
  0xbd   : > { %v710_v57 = vand.u32 2147483647, %v1687_v42  ;;  %v671_v10 = vor.u32 1.1754944e-38, %v670_v56  ;;  %v712_v11 = vand.u32 2147483648, %v1687_v42  ;;  %v727_v14 = vor.u32 1.1754944e-38, %v726_v59  ;;  %v571_v63 = vld [vmem:[#allocation3 + $0x70] sm:$0xff] }
  0xbe   : > { %553 = vst.msk [vmem:[#allocation3 + $0x78] sm:$0xff] %vm295_vm0, %v536_v49  ;;  %v677_v58 = vadd.f32 %v1270_v30, %v676_v51  ;;  %v569_v62 = vld [vmem:[#allocation3 + $0x60] sm:$0xff]  ;;  %vm680_vm0 = vmor %vm678_vm7, %vm679_vm8  ;;  %vm669_vm14 = vcmp.eq.f32.partialorder %v668_v61, 8.507059e+37  ;;  %vm706_vm15 = vweird.f32 %v1687_v42  ;;  %v1744_v17 = vmax.f32 %v567_v8, 1.0 }
  0xbf   : > { %v1272_v1 = vpop.eup %1271  ;;  %v1724_v3 = vmax.f32 %v569_v62, 1.0  ;;  %v672_v15 = vsel %vm669_vm14, %v671_v10, %v667_v7  ;;  %vm1747_vm2 = vcmp.eq.f32.partialorder %v710_v57, 8.507059e+37  ;;  %v713_v22 = vor.u32 1.1754944e-38, %v712_v11  ;;  %v570_v7 = vld [vmem:[#allocation3 + $0x68] sm:$0xff] }
  0xc0   : > { %v681_v5 = vsel %vm680_vm0, %v1270_v30, %v677_v58  ;;  %v716_v16 = vmul.f32 %v1272_v1, %v1668_v34  ;;  %v1274_v47 = vpop.eup %1273  ;;  %vm721_vm1 = vweird.f32 %v1272_v1  ;;  %v1753_v26 = vmax.f32 %v571_v63, 1.0 }
  0xc1   : > { %v686_v9 = vsel %vm1701_vm10, %v685_v55, %v681_v5  ;;  %1275 = vrcp.f32 %v1724_v3  ;;  %v702_v20 = vmul.f32 %v1274_v47, %v1687_v42  ;;  %v766_v23 = vand.u32 2147483647, %v1724_v3  ;;  %vm722_vm4 = vmor %vm720_vm12, %vm721_vm1 }
  0xc2   : > { %862 = vperm.xlu2 %1255, %v644_v2   ;;  %877 = vperm.xlu1 %1254, %v686_v9   ;;  %v717_v12 = vsub.f32 1.0, %v716_v16  ;;  %1277 = vrcp.f32 %v1716_v0  ;;  %v768_v24 = vand.u32 2147483648, %v1724_v3  ;;  %vm762_vm3 = vweird.f32 %v1724_v3 }
  0xc3   : > { %1279 = vrcp.f32 %v1726_v4  ;;  %v703_v28 = vsub.f32 1.0, %v702_v20  ;;  %v696_v29 = vand.u32 2147483647, %v1716_v0  ;;  %vm692_vm5 = vweird.f32 %v1716_v0 }
  0xc4   : > { %v718_v19 = vmul.f32 %v1272_v1, %v717_v12  ;;  %v698_v31 = vand.u32 2147483648, %v1716_v0  ;;  %1281 = vrcp.f32 %v1744_v17  ;;  %vm707_vm6 = vweird.f32 %v1274_v47 }
  0xc5   : > { %v572_v13 = vld [vmem:[#allocation3 + $0x78] sm:$0xff]  ;;  %v704_v36 = vmul.f32 %v1274_v47, %v703_v28  ;;  %vm1769_vm7 = vcmp.eq.f32.partialorder %v766_v23, 8.507059e+37  ;;  %v769_v39 = vor.u32 1.1754944e-38, %v768_v24  ;;  %vm1774_vm8 = vcmp.eq.f32.partialorder %v696_v29, 8.507059e+37  ;;  %vm708_vm9 = vmor %vm706_vm15, %vm707_vm6 }
  0xc6   : > { %v719_v27 = vadd.f32 %v1272_v1, %v718_v19  ;;  %v1761_v32 = vmax.f32 %v572_v13, 1.0  ;;  %v699_v46 = vor.u32 1.1754944e-38, %v698_v31  ;;  %vm748_vm0 = vweird.f32 %v1726_v4 }
  0xc7   : > { %v1276_v30 = vpop.eup %1275  ;;  %v705_v41 = vadd.f32 %v1274_v47, %v704_v36  ;;  %v752_v54 = vand.u32 2147483647, %v1726_v4  ;;  %v754_v60 = vand.u32 2147483648, %v1726_v4  ;;  %vm734_vm15 = vweird.f32 %v1744_v17 }
  0xc8   : > { %v1278_v33 = vpop.eup %1277  ;;  %v723_v35 = vsel %vm722_vm4, %v1272_v1, %v719_v27  ;;  %v758_v37 = vmul.f32 %v1276_v30, %v1724_v3  ;;  %1283 = vrcp.f32 %v1761_v32  ;;  %vm763_vm11 = vweird.f32 %v1276_v30 }
  0xc9   : > { %v1765_v38 = vpop.eup %1279  ;;  %v728_v34 = vsel %vm1729_vm13, %v727_v14, %v723_v35  ;;  %v688_v40 = vmul.f32 %v1278_v33, %v1716_v0  ;;  %vm693_vm10 = vweird.f32 %v1278_v33  ;;  %v709_v48 = vsel %vm708_vm9, %v1274_v47, %v705_v41  ;;  %vm764_vm14 = vmor %vm762_vm3, %vm763_vm11 }
  0xca   : > { %892 = vperm.xlu0 %1256, %v728_v34   ;;  %872 = vperm.xlu2 %1255, %v672_v15   ;;  %v759_v43 = vsub.f32 1.0, %v758_v37  ;;  %v744_v45 = vmul.f32 %v1765_v38, %v1726_v4  ;;  %v1282_v51 = vpop.eup %1281  ;;  %v714_v52 = vsel %vm1747_vm2, %v713_v22, %v709_v48  ;;  %vm1789_vm12 = vmor %vm692_vm5, %vm693_vm10  ;;  %vm749_vm13 = vweird.f32 %v1765_v38 }
  0xcb   : > { %v689_v25 = vsub.f32 1.0, %v688_v40  ;;  %887 = vperm.xlu1 %1254, %v714_v52   ;;  %v730_v58 = vmul.f32 %v1282_v51, %v1744_v17  ;;  %1285 = vrcp.f32 %v1753_v26  ;;  %v740_v1 = vand.u32 2147483648, %v1744_v17  ;;  %vm1809_vm1 = vmor %vm748_vm0, %vm749_vm13 }
  0xcc   : > { %v760_v49 = vmul.f32 %v1276_v30, %v759_v43  ;;  %v745_v50 = vsub.f32 1.0, %v744_v45  ;;  %vm735_vm2 = vweird.f32 %v1282_v51  ;;  %v738_v6 = vand.u32 2147483647, %v1744_v17 }
  0xcd   : > { %v690_v53 = vmul.f32 %v1278_v33, %v689_v25  ;;  %v731_v0 = vsub.f32 1.0, %v730_v58  ;;  %vm753_vm3 = vcmp.eq.f32.partialorder %v752_v54, 8.507059e+37  ;;  %v755_v4 = vor.u32 1.1754944e-38, %v754_v60  ;;  %vm1823_vm4 = vmor %vm734_vm15, %vm735_vm2  ;;  %v816_v58 = vld [vmem:[%s2045_s3 + $0x18] sm:$0xff] }
  0xce   : > { %v761_v42 = vadd.f32 %v1276_v30, %v760_v49  ;;  %v746_v56 = vmul.f32 %v1765_v38, %v745_v50  ;;  %v1284_v2 = vpop.eup %1283  ;;  %v808_v12 = vand.u32 2147483647, %v1761_v32  ;;  %v741_v63 = vor.u32 1.1754944e-38, %v740_v1  ;;  %v405_v49 = vpop.f32.mrf.mxu1 }
  0xcf   : > { %v691_v59 = vadd.f32 %v1278_v33, %v690_v53  ;;  %v800_v9 = vmul.f32 %v1284_v2, %v1761_v32  ;;  %v732_v10 = vmul.f32 %v1282_v51, %v731_v0  ;;  %v586_v47 = vmax.f32 %v570_v7, 1.0  ;;  %v818_v0 = vld [vmem:[%s2045_s3 + $0x28] sm:$0xff] }
  0xd0   : > { %v765_v61 = vsel %vm764_vm14, %v1276_v30, %v761_v42  ;;  %v747_v62 = vadd.f32 %v1765_v38, %v746_v56  ;;  %v810_v20 = vand.u32 2147483648, %v1761_v32  ;;  %vm739_vm5 = vcmp.eq.f32.partialorder %v738_v6, 8.507059e+37  ;;  %v815_v6 = vld [vmem:[%s2045_s3 + $0x10] sm:$0xff] }
  0xd1   : > { %v770_v5 = vsel %vm1769_vm7, %v769_v39, %v765_v61  ;;  %v695_v3 = vsel %vm1789_vm12, %v1278_v33, %v691_v59  ;;  %v801_v11 = vsub.f32 1.0, %v800_v9  ;;  %v1286_v15 = vpop.eup %1285  ;;  %v733_v21 = vadd.f32 %v1282_v51, %v732_v10  ;;  %v417_v61 = vpop.f32.mrf.mxu2 }
  0xd2   : > { %907 = vperm.xlu0 %1256, %v770_v5   ;;  %v700_v57 = vsel %vm1774_vm8, %v699_v46, %v695_v3  ;;  %v751_v8 = vsel %vm1809_vm1, %v1765_v38, %v747_v62  ;;  %vm805_vm6 = vweird.f32 %v1284_v2  ;;  %v786_v23 = vmul.f32 %v1286_v15, %v1753_v26  ;;  %v393_v46 = vpop.f32.mrf.mxu0 }
  0xd3   : > { %882 = vperm.xlu2 %1255, %v700_v57   ;;  %v756_v19 = vsel %vm753_vm3, %v755_v4, %v751_v8  ;;  %v802_v22 = vmul.f32 %v1284_v2, %v801_v11  ;;  %1287 = vrcp.f32 %v586_v47  ;;  %v737_v17 = vsel %vm1823_vm4, %v1282_v51, %v733_v21  ;;  %v814_v51 = vld [vmem:[%s2045_s3 + $0x8] sm:$0xff] }
  0xd4   : > { %902 = vperm.xlu1 %1254, %v756_v19   ;;  %vm804_vm7 = vweird.f32 %v1761_v32  ;;  %v742_v13 = vsel %vm739_vm5, %v741_v63, %v737_v17  ;;  %v787_v27 = vsub.f32 1.0, %v786_v23  ;;  %vm809_vm9 = vcmp.eq.f32.partialorder %v808_v12, 8.507059e+37  ;;  %v817_v12 = vld [vmem:[%s2045_s3 + $0x20] sm:$0xff]  ;;  %v820_v63 = vld [vmem:[%s2045_s3 + $0x38] sm:$0xff]  ;;  %v819_v17 = vld [vmem:[%s2045_s3 + $0x30] sm:$0xff] }
  0xd5   : > { %v803_v24 = vadd.f32 %v1284_v2, %v802_v22  ;;  %vm806_vm8 = vmor %vm804_vm7, %vm805_vm6  ;;  %v811_v28 = vor.u32 1.1754944e-38, %v810_v20  ;;  %vm790_vm10 = vweird.f32 %v1753_v26  ;;  %v796_v29 = vand.u32 2147483648, %v1753_v26  ;;  %v429_v20 = vpop.f32.mrf.mxu3 }
  0xd6   : > { %v788_v31 = vmul.f32 %v1286_v15, %v787_v27  ;;  %vm791_vm11 = vweird.f32 %v1286_v15  ;;  %v794_v33 = vand.u32 2147483647, %v1753_v26  ;;  %vm776_vm13 = vweird.f32 %v586_v47  ;;  %v408_v42 = vpop.f32.mrf.mxu1 }
  0xd7   : > { %v807_v30 = vsel %vm806_vm8, %v1284_v2, %v803_v24  ;;  %vm792_vm0 = vmor %vm790_vm10, %vm791_vm11  ;;  %v797_v32 = vor.u32 1.1754944e-38, %v796_v29  ;;  %v782_v18 = vand.u32 2147483648, %v586_v47  ;;  %v780_v41 = vand.u32 2147483647, %v586_v47  ;;  %v813_v2 = vld [vmem:[%s2045_s3] sm:$0xff] }
  0xd8   : > { %v812_v35 = vsel %vm809_vm9, %v811_v28, %v807_v30  ;;  %v789_v37 = vadd.f32 %v1286_v15, %v788_v31  ;;  %vm795_vm12 = vcmp.eq.f32.partialorder %v794_v33, 8.507059e+37 }
  0xd9   : > { %v1288_v36 = vpop.eup %1287  ;;  %v783_v26 = vor.u32 1.1754944e-38, %v782_v18  ;;  %vm781_vm1 = vcmp.eq.f32.partialorder %v780_v41, 8.507059e+37  ;;  %v420_v10 = vpop.f32.mrf.mxu2  ;;  %v826_v18 = vld [vmem:[%s2045_s3 + $0x68] sm:$0xff] }
  0xda   : > { %922 = vperm.xlu0 %1256, %v812_v35   ;;  %v772_v38 = vmul.f32 %v1288_v36, %v586_v47  ;;  %v793_v34 = vsel %vm792_vm0, %v1286_v15, %v789_v37  ;;  %vm777_vm14 = vweird.f32 %v1288_v36  ;;  %v396_v48 = vpop.f32.mrf.mxu0  ;;  %v822_v35 = vld [vmem:[%s2045_s3 + $0x48] sm:$0xff] }
  0xdb   : > { %897 = vperm.xlu2 %1255, %v742_v13   ;;  %v798_v39 = vsel %vm795_vm12, %v797_v32, %v793_v34  ;;  %vm778_vm15 = vmor %vm776_vm13, %vm777_vm14  ;;  %v823_v13 = vld [vmem:[%s2045_s3 + $0x50] sm:$0xff] }
  0xdc   : > { %v773_v40 = vsub.f32 1.0, %v772_v38  ;;  %917 = vperm.xlu1 %1254, %v798_v39   ;;  %v821_v38 = vld [vmem:[%s2045_s3 + $0x40] sm:$0xff] }
  0xdd   : > { %v432_v33 = vpop.f32.mrf.mxu3 }
  0xde   : > { %v774_v43 = vmul.f32 %v1288_v36, %v773_v40  ;;  %v411_v62 = vpop.f32.mrf.mxu1 }
  0xe0   : > { %v775_v44 = vadd.f32 %v1288_v36, %v774_v43 }
  0xe1   : > { %v423_v23 = vpop.f32.mrf.mxu2 }
  0xe2   : > { %v779_v45 = vsel %vm778_vm15, %v1288_v36, %v775_v44  ;;  %v399_v50 = vpop.f32.mrf.mxu0 }
  0xe3   : > { %v784_v25 = vsel %vm781_vm1, %v783_v26, %v779_v45  ;;  %v825_v45 = vld [vmem:[%s2045_s3 + $0x60] sm:$0xff] }
  0xe4   : > { %912 = vperm.xlu2 %1255, %v784_v25  }
  0xe5   : > { %v435_v43 = vpop.f32.mrf.mxu3 }
  0xe6   : > { %v414_v11 = vpop.f32.mrf.mxu1 }
  0xea   : > { %v402_v55 = vpop.f32.mrf.mxu0 }
 0x114   : > { %v853_v52 = vpop.permute.xlu2 %852 }
 0x115   : > { %v926_v53 = vmul.f32 %v853_v52, %v396_v48  ;;  %v426_v48 = vpop.f32.mrf.mxu2 }
 0x117   : > { %v942_v54 = vadd.f32 %v926_v53, %v814_v51 }
 0x119   : > { %958 = vst [vmem:[%s2045_s3 + $0x8] sm:$0xff] %v942_v54  ;;  %v438_v54 = vpop.f32.mrf.mxu3 }
 0x11c   : > { %v863_v56 = vpop.permute.xlu2 %862 }
 0x11d   : > { %v928_v59 = vmul.f32 %v863_v56, %v402_v55 }
 0x11f   : > { %v944_v60 = vadd.f32 %v928_v59, %v816_v58  ;;  %v827_v59 = vld [vmem:[%s2045_s3 + $0x70] sm:$0xff] }
 0x121   : > { %960 = vst [vmem:[%s2045_s3 + $0x18] sm:$0xff] %v944_v60 }
 0x124   : > { %v873_v1 = vpop.permute.xlu2 %872  ;;  %v848_v5 = vpop.permute.xlu1 %847 }
 0x125   : > { %v930_v3 = vmul.f32 %v873_v1, %v408_v42  ;;  %v925_v16 = vmul.f32 %v848_v5, %v393_v46  ;;  %v858_v7 = vpop.permute.xlu0 %857  ;;  %v828_v42 = vld [vmem:[%s2045_s3 + $0x78] sm:$0xff]  ;;  %v1289_v1 = vld [vmem:[%s2044_s2] ss:$0 sm:$0xff] (%p973_p6) }
 0x126   : > { %v927_v57 = vmul.f32 %v858_v7, %v399_v50  ;;  %v824_v50 = vld [vmem:[%s2045_s3 + $0x58] sm:$0xff] }
 0x127   : > { %v946_v8 = vadd.f32 %v930_v3, %v818_v0  ;;  %v941_v9 = vadd.f32 %v925_v16, %v813_v2  ;;  %v979_v2 = vld [vmem:[%s2045_s3 + $0x8] sm:$0xff] (%p973_p6) }
 0x128   : > { %v943_v4 = vadd.f32 %v927_v57, %v815_v6  ;;  %v981_v3 = vld [vmem:[%s2045_s3 + $0x18] sm:$0xff] (%p973_p6)  ;;  %v999_v6 = vadd.f32 (%p973_p6), %v1289_v1, %v979_v2 }
 0x129   : > { %962 = vst [vmem:[%s2045_s3 + $0x28] sm:$0xff] %v946_v8 }
 0x12a   : > { %957 = vst [vmem:[%s2045_s3] sm:$0xff] %v941_v9  ;;  %v1001_v9 = vadd.f32 (%p973_p6), %v1289_v1, %v981_v3 }
 0x12b   : > { %959 = vst [vmem:[%s2045_s3 + $0x10] sm:$0xff] %v943_v4 }
 0x12c   : > { %v868_v14 = vpop.permute.xlu1 %867  ;;  %1015 = vst [vmem:[%s2045_s3 + $0x8] sm:$0xff] (%p973_p6), %v999_v6 }
 0x12d   : > { %v883_v47 = vpop.permute.xlu2 %882  ;;  %v929_v15 = vmul.f32 %v868_v14, %v405_v49  ;;  %1017 = vst [vmem:[%s2045_s3 + $0x18] sm:$0xff] (%p973_p6), %v1001_v9 }
 0x12e   : > { %v932_v19 = vmul.f32 %v883_v47, %v414_v11 }
 0x12f   : > { %v945_v21 = vadd.f32 %v929_v15, %v817_v12 }
 0x130   : > { %v948_v22 = vadd.f32 %v932_v19, %v820_v63  ;;  %v983_v8 = vld [vmem:[%s2045_s3 + $0x28] sm:$0xff] (%p973_p6) }
 0x131   : > { %961 = vst [vmem:[%s2045_s3 + $0x20] sm:$0xff] %v945_v21  ;;  %v978_v0 = vld [vmem:[%s2045_s3] sm:$0xff] (%p973_p6)  ;;  %v1003_v12 = vadd.f32 (%p973_p6), %v1289_v1, %v983_v8 }
 0x132   : > { %964 = vst [vmem:[%s2045_s3 + $0x38] sm:$0xff] %v948_v22  ;;  %v980_v5 = vld [vmem:[%s2045_s3 + $0x10] sm:$0xff] (%p973_p6)  ;;  %v998_v16 = vadd.f32 (%p973_p6), %v1289_v1, %v978_v0 }
 0x133   : > { %v1000_v7 = vadd.f32 (%p973_p6), %v1289_v1, %v980_v5  ;;  %1019 = vst [vmem:[%s2045_s3 + $0x28] sm:$0xff] (%p973_p6), %v1003_v12 }
 0x134   : > { %v878_v24 = vpop.permute.xlu1 %877  ;;  %1014 = vst [vmem:[%s2045_s3] sm:$0xff] (%p973_p6), %v998_v16 }
 0x135   : > { %v898_v27 = vpop.permute.xlu2 %897  ;;  %v931_v28 = vmul.f32 %v878_v24, %v411_v62  ;;  %1016 = vst [vmem:[%s2045_s3 + $0x10] sm:$0xff] (%p973_p6), %v1000_v7 }
 0x136   : > { %v935_v29 = vmul.f32 %v898_v27, %v423_v23 }
 0x137   : > { %v947_v30 = vadd.f32 %v931_v28, %v819_v17 }
 0x138   : > { %v951_v31 = vadd.f32 %v935_v29, %v823_v13  ;;  %v982_v57 = vld [vmem:[%s2045_s3 + $0x20] sm:$0xff] (%p973_p6) }
 0x139   : > { %963 = vst [vmem:[%s2045_s3 + $0x30] sm:$0xff] %v947_v30  ;;  %v985_v11 = vld [vmem:[%s2045_s3 + $0x38] sm:$0xff] (%p973_p6) }
 0x13a   : > { %967 = vst [vmem:[%s2045_s3 + $0x50] sm:$0xff] %v951_v31  ;;  %v1005_v15 = vadd.f32 (%p973_p6), %v1289_v1, %v985_v11 }
 0x13c   : > { %v893_v36 = vpop.permute.xlu0 %892  ;;  %1021 = vst [vmem:[%s2045_s3 + $0x38] sm:$0xff] (%p973_p6), %v1005_v15 }
 0x13d   : > { %v934_v37 = vmul.f32 %v893_v36, %v420_v10  ;;  %v888_v34 = vpop.permute.xlu1 %887  ;;  %v1002_v10 = vadd.f32 (%p973_p6), %v1289_v1, %v982_v57 }
 0x13e   : > { %v913_v39 = vpop.permute.xlu2 %912  ;;  %v933_v40 = vmul.f32 %v888_v34, %v417_v61 }
 0x13f   : > { %v950_v32 = vadd.f32 %v934_v37, %v822_v35  ;;  %v938_v41 = vmul.f32 %v913_v39, %v432_v33  ;;  %1018 = vst [vmem:[%s2045_s3 + $0x20] sm:$0xff] (%p973_p6), %v1002_v10 }
 0x140   : > { %v949_v26 = vadd.f32 %v933_v40, %v821_v38  ;;  %v984_v4 = vld [vmem:[%s2045_s3 + $0x30] sm:$0xff] (%p973_p6) }
 0x141   : > { %966 = vst [vmem:[%s2045_s3 + $0x48] sm:$0xff] %v950_v32  ;;  %v954_v44 = vadd.f32 %v938_v41, %v826_v18  ;;  %v1004_v63 = vadd.f32 (%p973_p6), %v1289_v1, %v984_v4  ;;  %v988_v19 = vld [vmem:[%s2045_s3 + $0x50] sm:$0xff] (%p973_p6) }
 0x142   : > { %965 = vst [vmem:[%s2045_s3 + $0x40] sm:$0xff] %v949_v26  ;;  %v1008_v17 = vadd.f32 (%p973_p6), %v1289_v1, %v988_v19 }
 0x143   : > { %970 = vst [vmem:[%s2045_s3 + $0x68] sm:$0xff] %v954_v44 }
 0x144   : > { %v908_v25 = vpop.permute.xlu0 %907  ;;  %1020 = vst [vmem:[%s2045_s3 + $0x30] sm:$0xff] (%p973_p6), %v1004_v63 }
 0x145   : > { %v937_v46 = vmul.f32 %v908_v25, %v429_v20  ;;  %1024 = vst [vmem:[%s2045_s3 + $0x50] sm:$0xff] (%p973_p6), %v1008_v17 }
 0x146   : > { %v903_v51 = vpop.permute.xlu1 %902 }
 0x147   : > { %v953_v49 = vadd.f32 %v937_v46, %v825_v45  ;;  %v936_v52 = vmul.f32 %v903_v51, %v426_v48 }
 0x148   : > { %v987_v47 = vld [vmem:[%s2045_s3 + $0x48] sm:$0xff] (%p973_p6) }
 0x149   : > { %969 = vst [vmem:[%s2045_s3 + $0x60] sm:$0xff] %v953_v49  ;;  %v952_v53 = vadd.f32 %v936_v52, %v824_v50  ;;  %v986_v14 = vld [vmem:[%s2045_s3 + $0x40] sm:$0xff] (%p973_p6)  ;;  %v1007_v22 = vadd.f32 (%p973_p6), %v1289_v1, %v987_v47 }
 0x14a   : > { %v1006_v20 = vadd.f32 (%p973_p6), %v1289_v1, %v986_v14  ;;  %v991_v24 = vld [vmem:[%s2045_s3 + $0x68] sm:$0xff] (%p973_p6) }
 0x14b   : > { %968 = vst [vmem:[%s2045_s3 + $0x58] sm:$0xff] %v952_v53  ;;  %v1011_v30 = vadd.f32 (%p973_p6), %v1289_v1, %v991_v24 }
 0x14c   : > { %v923_v55 = vpop.permute.xlu0 %922  ;;  %1022 = vst [vmem:[%s2045_s3 + $0x40] sm:$0xff] (%p973_p6), %v1006_v20 }
 0x14d   : > { %v940_v56 = vmul.f32 %v923_v55, %v438_v54  ;;  %1023 = vst [vmem:[%s2045_s3 + $0x48] sm:$0xff] (%p973_p6), %v1007_v22 }
 0x14e   : > { %v918_v60 = vpop.permute.xlu1 %917  ;;  %1027 = vst [vmem:[%s2045_s3 + $0x68] sm:$0xff] (%p973_p6), %v1011_v30 }
 0x14f   : > { %v956_v58 = vadd.f32 %v940_v56, %v828_v42  ;;  %v939_v61 = vmul.f32 %v918_v60, %v435_v43  ;;  %977 = sbr.rel (!%p973_p6) target bundleno = 350 (0x15e), region = 48 }
 0x150   : > { %v990_v23 = vld [vmem:[%s2045_s3 + $0x60] sm:$0xff] (%p973_p6) }
 0x151   : > { %972 = vst [vmem:[%s2045_s3 + $0x78] sm:$0xff] %v956_v58  ;;  %v955_v62 = vadd.f32 %v939_v61, %v827_v59  ;;  %v1010_v28 = vadd.f32 (%p973_p6), %v1289_v1, %v990_v23 }
 0x152   : > { %v989_v21 = vld [vmem:[%s2045_s3 + $0x58] sm:$0xff] (%p973_p6) }
 0x153   : > { %971 = vst [vmem:[%s2045_s3 + $0x70] sm:$0xff] %v955_v62  ;;  %v1009_v13 = vadd.f32 (%p973_p6), %v1289_v1, %v989_v21 }
 0x154   : > { %1026 = vst [vmem:[%s2045_s3 + $0x60] sm:$0xff] %v1010_v28 }
 0x155   : > { %1025 = vst [vmem:[%s2045_s3 + $0x58] sm:$0xff] %v1009_v13 }
 0x158   : > { %v993_v29 = vld [vmem:[%s2045_s3 + $0x78] sm:$0xff] }
 0x159   : > { %v1013_v33 = vadd.f32 %v1289_v1, %v993_v29 }
 0x15a   : > { %v992_v27 = vld [vmem:[%s2045_s3 + $0x70] sm:$0xff] }
 0x15b   : > { %v1012_v31 = vadd.f32 %v1289_v1, %v992_v27  ;;  %1029 = vst [vmem:[%s2045_s3 + $0x78] sm:$0xff] %v1013_v33 }
 0x15d   : > { %1028 = vst [vmem:[%s2045_s3 + $0x70] sm:$0xff] %v1012_v31 }
 0x15e PF: > { %s13_s14 = sadd.s32 1, %s1312_s14   ;;  %s2080_s12 = smov %s1308_s13 }
 0x15f   : > { %p10_p7 = scmp.ge.s32.totalorder %s13_s14, 5   ;;  %s2081_s13 = smov %s2083_s15 }
 0x161   :  { %12 = sbr.rel (!%p10_p7) target bundleno = 2 (0x2), region = 81 }

// kernel: model_forward.3
= control target key start
LH: loop header
LB: loop body
LE: loop exit
PB: predicated region body
PF: predicated region fallthrough
CT: control target
= control target key end

     0   :  { %s1385_s12 = smov 0   ;;  %s1387_s13 = smov 0   ;;  %s2108_s0 = inlined_call_operand.vmem [shape: bf16[3,128,128], index: 0, kind: input, shape index: {}]   ;;  %s2109_s1 = inlined_call_operand.vmem [shape: f32[3,128,128], index: 1, kind: input, shape index: {}]   ;;  %s2110_s2 = inlined_call_operand.vmem [shape: f32[1,128], index: 2, kind: input, shape index: {}]   ;;  %s2111_s3 = inlined_call_operand.vmem [shape: f32[128,128], index: 3, kind: output, shape index: {}]  }
   0x1   :  { %s1389_s14 = smov 0  }
   0x2 LB: > { %s28_s15 = sadd.s32 1, %s1356_s13  ;;  %p1173_p0 = scmp.ge.s32.totalorder %s1360_s14, 1  ;;  %s1360_s14 = sphi %s1389_s14, %s13_s14   ;;  %s1356_s13 = sphi %s1387_s13, %s2147_s13   ;;  %s1352_s12 = sphi %s1385_s12, %s2146_s12  }
   0x3   : > { %p30_p1 = scmp.ge.s32.totalorder %s28_s15, 3  ;;  %p185_p2 = scmp.lt.s32.totalorder %s1360_s14, 4 }
   0x5   : > { %s2149_s15 = smov (%p30_p1, %s28_s15), 0  ;;  %p186_p3 = pnand %p1173_p0, %p185_p2 }
   0x6   : > { %p226_p4 = scmp.lt.s32.totalorder (!%p186_p3), %s1352_s12, 2  ;;  %p254_p5 = scmp.eq.s32.totalorder (!%p186_p3), %s1352_s12, 0 }
   0x7   : > { %189 = sbr.rel (%p186_p3) target bundleno = 353 (0x161), region = 32 }
   0xc   : > { %s227_s16 = scalar_select %p226_p4, %s1352_s12, 2  ;;  %v1362_v0 = vmov (%p254_p5), 0.0  }
   0xd   : > { %259 = sbr.rel (!%p254_p5) target bundleno = 29 (0x1d), region = 36  ;;  %260 = vst [vmem:[%s2111_s3] sm:$0xff] (%p254_p5), %v1362_v0 }
   0xe   : > { %s1184_s17 = sshll.u32 %s227_s16, 6  ;;  %s1185_s18 = sshll.u32 %s227_s16, 7  ;;  %261 = vst [vmem:[%s2111_s3 + $0x8] sm:$0xff] (%p254_p5), %v1362_v0 }
   0xf   : > { %s1411_s21 = scalar_lea.vmem %s2108_s0, %s1184_s17  ;;  %s1416_s24 = scalar_lea.vmem %s2109_s1, %s1185_s18  ;;  %262 = vst [vmem:[%s2111_s3 + $0x10] sm:$0xff] (%p254_p5), %v1362_v0 }
  0x10   : > { %263 = vst [vmem:[%s2111_s3 + $0x18] sm:$0xff] (%p254_p5), %v1362_v0 }
  0x11   : > { %264 = vst [vmem:[%s2111_s3 + $0x20] sm:$0xff] (%p254_p5), %v1362_v0 }
  0x12   : > { %265 = vst [vmem:[%s2111_s3 + $0x28] sm:$0xff] %v1362_v0 }
  0x13   : > { %266 = vst [vmem:[%s2111_s3 + $0x30] sm:$0xff] %v1362_v0 }
  0x14   : > { %267 = vst [vmem:[%s2111_s3 + $0x38] sm:$0xff] %v1362_v0 }
  0x15   : > { %268 = vst [vmem:[%s2111_s3 + $0x40] sm:$0xff] %v1362_v0 }
  0x16   : > { %269 = vst [vmem:[%s2111_s3 + $0x48] sm:$0xff] %v1362_v0 }
  0x17   : > { %270 = vst [vmem:[%s2111_s3 + $0x50] sm:$0xff] %v1362_v0 }
  0x18   : > { %271 = vst [vmem:[%s2111_s3 + $0x58] sm:$0xff] %v1362_v0 }
  0x19   : > { %272 = vst [vmem:[%s2111_s3 + $0x60] sm:$0xff] %v1362_v0 }
  0x1a   : > { %273 = vst [vmem:[%s2111_s3 + $0x68] sm:$0xff] %v1362_v0 }
  0x1b   : > { %274 = vst [vmem:[%s2111_s3 + $0x70] sm:$0xff] %v1362_v0 }
  0x1c   : > { %275 = vst [vmem:[%s2111_s3 + $0x78] sm:$0xff] %v1362_v0 }
  0x1d PF: > { %v1467_v1 = vld [vmem:[%s1411_s21 + $0x10] sm:$0xff]   ;;  %v1470_v2 = vld [vmem:[%s1411_s21] sm:$0xff]   ;;  %v1473_v3 = vld [vmem:[%s1411_s21 + $0x8] sm:$0xff]   ;;  %vm295_vm0 = vcmask 7168   ;;  %v1363_v41 = vmov 0.0   ;;  %v1364_v42 = vmov 0  }
  0x1e   : > { %v1198_v4 = vunpack.c.l.bf16 %v1467_v1  ;;  %v1190_v5 = vunpack.c.l.bf16 %v1470_v2  ;;  %v1194_v6 = vunpack.c.l.bf16 %v1473_v3  ;;  %v1199_v7 = vunpack.c.h.bf16 %v1467_v1  ;;  %v375_v10 = vld [vmem:[%s1416_s24 + $0x78] sm:$0xff]  ;;  %v374_v11 = vld [vmem:[%s1416_s24 + $0x70] sm:$0xff]  ;;  %v1494_v12 = vld [vmem:[%s1411_s21 + $0x20] sm:$0xff]   ;;  %300 = vst.msk [vmem:[#allocation3 + $0x20] sm:$0xff] %vm295_vm0, %v1363_v41  ;;  %1302 = vset.pattern.permute.xlu1 %v1364_v42  ;;  %1304 = vset.pattern.permute.xlu0 %v1364_v42  ;;  %p973_p6 = scmp.eq.s32.totalorder %s1352_s12, 2 }
  0x1f   : > { %v1191_v8 = vunpack.c.h.bf16 %v1470_v2  ;;  %v1195_v9 = vunpack.c.h.bf16 %v1473_v3  ;;  %v1499_v13 = vld [vmem:[%s1411_s21 + $0x18] sm:$0xff]   ;;  %376 = vmatpush.msra.mxu0 %v375_v10  ;;  %v373_v14 = vld [vmem:[%s1416_s24 + $0x68] sm:$0xff]  ;;  %1227 = vmatpush.msra.mxu1 %v375_v10  ;;  %v1206_v15 = vunpack.c.l.bf16 %v1494_v12  ;;  %v372_v17 = vld [vmem:[%s1416_s24 + $0x60] sm:$0xff]  ;;  %v1207_v24 = vunpack.c.h.bf16 %v1494_v12  ;;  %296 = vst.msk [vmem:[#allocation3] sm:$0xff] %vm295_vm0, %v1363_v41 }
  0x20   : > { %497 = vadd.xlane.f32.xlu2 %v1198_v4  ;;  %489 = vadd.xlane.f32.xlu0 %v1190_v5  ;;  %v1202_v16 = vunpack.c.l.bf16 %v1499_v13  ;;  %v1203_v18 = vunpack.c.h.bf16 %v1499_v13  ;;  %v371_v19 = vld [vmem:[%s1416_s24 + $0x58] sm:$0xff]  ;;  %v370_v20 = vld [vmem:[%s1416_s24 + $0x50] sm:$0xff]  ;;  %v1513_v21 = vld [vmem:[%s1411_s21 + $0x28] sm:$0xff]   ;;  %297 = vst.msk [vmem:[#allocation3 + $0x8] sm:$0xff] %vm295_vm0, %v1363_v41 }
  0x21   : > { %493 = vadd.xlane.f32.xlu1 %v1194_v6  ;;  %1228 = vmatpush.msra.mxu2 %v375_v10  ;;  %v369_v22 = vld [vmem:[%s1416_s24 + $0x48] sm:$0xff]  ;;  %v1211_v23 = vunpack.c.h.bf16 %v1513_v21  ;;  %v368_v25 = vld [vmem:[%s1416_s24 + $0x40] sm:$0xff]  ;;  %v1210_v26 = vunpack.c.l.bf16 %v1513_v21  ;;  %v367_v27 = vld [vmem:[%s1416_s24 + $0x38] sm:$0xff]  ;;  %298 = vst.msk [vmem:[#allocation3 + $0x10] sm:$0xff] %vm295_vm0, %v1363_v41 }
  0x22   : > { %377 = vmatpush.msra.mxu0 %v374_v11  ;;  %1229 = vmatpush.msra.mxu3 %v375_v10  ;;  %v366_v28 = vld [vmem:[%s1416_s24 + $0x30] sm:$0xff]  ;;  %v1529_v29 = vld [vmem:[%s1411_s21 + $0x38] sm:$0xff]   ;;  %v365_v31 = vld [vmem:[%s1416_s24 + $0x28] sm:$0xff]  ;;  %299 = vst.msk [vmem:[#allocation3 + $0x18] sm:$0xff] %vm295_vm0, %v1363_v41 }
  0x23   : > { %1230 = vmatpush.msra.mxu1 %v374_v11  ;;  %1231 = vmatpush.msra.mxu2 %v374_v11  ;;  %v1225_v30 = vld [vmem:[%s1411_s21 + $0x30] sm:$0xff]   ;;  %v1218_v32 = vunpack.c.l.bf16 %v1529_v29  ;;  %v364_v34 = vld [vmem:[%s1416_s24 + $0x20] sm:$0xff]  ;;  %v363_v36 = vld [vmem:[%s1416_s24 + $0x18] sm:$0xff]  ;;  %v1219_v39 = vunpack.c.h.bf16 %v1529_v29  ;;  %301 = vst.msk [vmem:[#allocation3 + $0x28] sm:$0xff] %vm295_vm0, %v1363_v41 }
  0x24   : > { %378 = vmatpush.msra.mxu0 %v373_v14  ;;  %1232 = vmatpush.msra.mxu3 %v374_v11  ;;  %v1214_v33 = vunpack.c.l.bf16 %v1225_v30  ;;  %v1215_v35 = vunpack.c.h.bf16 %v1225_v30  ;;  %v362_v37 = vld [vmem:[%s1416_s24 + $0x10] sm:$0xff]  ;;  %v361_v38 = vld [vmem:[%s1416_s24 + $0x8] sm:$0xff]  ;;  %v360_v40 = vld [vmem:[%s1416_s24] sm:$0xff]  ;;  %302 = vst.msk [vmem:[#allocation3 + $0x30] sm:$0xff] %vm295_vm0, %v1363_v41 }
  0x25   : > { %1233 = vmatpush.msra.mxu1 %v373_v14  ;;  %1234 = vmatpush.msra.mxu2 %v373_v14  ;;  %303 = vst.msk [vmem:[#allocation3 + $0x38] sm:$0xff] %vm295_vm0, %v1363_v41  ;;  %v477_v43 = vld [vmem:[#allocation3 + $0x20] sm:$0xff] }
  0x26   : > { %379 = vmatpush.msra.mxu0 %v372_v17  ;;  %1235 = vmatpush.msra.mxu3 %v373_v14  ;;  %304 = vst.msk [vmem:[#allocation3 + $0x40] sm:$0xff] %vm295_vm0, %v1363_v41  ;;  %v473_v44 = vld [vmem:[#allocation3] sm:$0xff] }
  0x27   : > { %1236 = vmatpush.msra.mxu1 %v372_v17  ;;  %1237 = vmatpush.msra.mxu2 %v372_v17  ;;  %305 = vst.msk [vmem:[#allocation3 + $0x48] sm:$0xff] %vm295_vm0, %v1363_v41  ;;  %v474_v53 = vld [vmem:[#allocation3 + $0x8] sm:$0xff] }
  0x28   : > { %499 = vadd.xlane.f32.xlu2 %v1199_v7  ;;  %491 = vadd.xlane.f32.xlu0 %v1191_v8  ;;  %306 = vst.msk [vmem:[#allocation3 + $0x50] sm:$0xff] %vm295_vm0, %v1363_v41  ;;  %v475_v45 = vld [vmem:[#allocation3 + $0x10] sm:$0xff] }
  0x29   : > { %495 = vadd.xlane.f32.xlu1 %v1195_v9  ;;  %380 = vmatpush.msra.mxu0 %v371_v19  ;;  %307 = vst.msk [vmem:[#allocation3 + $0x58] sm:$0xff] %vm295_vm0, %v1363_v41  ;;  %v476_v54 = vld [vmem:[#allocation3 + $0x18] sm:$0xff] }
  0x2a   : > { %1238 = vmatpush.msra.mxu3 %v372_v17  ;;  %1239 = vmatpush.msra.mxu1 %v371_v19  ;;  %308 = vst.msk [vmem:[#allocation3 + $0x60] sm:$0xff] %vm295_vm0, %v1363_v41  ;;  %v478_v52 = vld [vmem:[#allocation3 + $0x28] sm:$0xff] }
  0x2b   : > { %381 = vmatpush.msra.mxu0 %v370_v20  ;;  %1240 = vmatpush.msra.mxu2 %v371_v19  ;;  %309 = vst.msk [vmem:[#allocation3 + $0x68] sm:$0xff] %vm295_vm0, %v1363_v41 }
  0x2c   : > { %1241 = vmatpush.msra.mxu3 %v371_v19  ;;  %1242 = vmatpush.msra.mxu1 %v370_v20  ;;  %310 = vst.msk [vmem:[#allocation3 + $0x70] sm:$0xff] %vm295_vm0, %v1363_v41 }
  0x2d   : > { %382 = vmatpush.msra.mxu0 %v369_v22  ;;  %1243 = vmatpush.msra.mxu2 %v370_v20  ;;  %311 = vst.msk [vmem:[#allocation3 + $0x78] sm:$0xff] %vm295_vm0, %v1363_v41  ;;  %v481_v3 = vld [vmem:[#allocation3 + $0x40] sm:$0xff] }
  0x2e   : > { %1244 = vmatpush.msra.mxu3 %v370_v20  ;;  %1245 = vmatpush.msra.mxu1 %v369_v22 }
  0x2f   : > { %383 = vmatpush.msra.mxu0 %v368_v25  ;;  %1246 = vmatpush.msra.mxu2 %v369_v22 }
  0x30   : > { %505 = vadd.xlane.f32.xlu2 %v1206_v15  ;;  %501 = vadd.xlane.f32.xlu0 %v1202_v16 }
  0x31   : > { %503 = vadd.xlane.f32.xlu1 %v1203_v18  ;;  %384 = vmatpush.msra.mxu0 %v367_v27 }
  0x32   : > { %1247 = vmatpush.msra.mxu3 %v369_v22  ;;  %1248 = vmatpush.msra.mxu1 %v368_v25 }
  0x33   : > { %385 = vmatpush.msra.mxu0 %v366_v28  ;;  %1249 = vmatpush.msra.mxu2 %v368_v25 }
  0x34   : > { %1250 = vmatpush.msra.mxu3 %v368_v25  ;;  %1251 = vmatpush.msra.mxu1 %v367_v27 }
  0x35   : > { %386 = vmatpush.msra.mxu0 %v365_v31  ;;  %1252 = vmatpush.msra.mxu2 %v367_v27 }
  0x36   : > { %1253 = vmatpush.msra.mxu3 %v367_v27  ;;  %1254 = vmatpush.msra.mxu1 %v366_v28  ;;  %v482_v27 = vld [vmem:[#allocation3 + $0x48] sm:$0xff] }
  0x37   : > { %387 = vmatpush.msra.mxu0 %v364_v34  ;;  %1255 = vmatpush.msra.mxu2 %v366_v28 }
  0x38   : > { %511 = vadd.xlane.f32.xlu2 %v1211_v23  ;;  %507 = vadd.xlane.f32.xlu0 %v1207_v24 }
  0x39   : > { %509 = vadd.xlane.f32.xlu1 %v1210_v26  ;;  %388 = vmatpush.msra.mxu0 %v363_v36 }
  0x3a   : > { %1256 = vmatpush.msra.mxu3 %v366_v28  ;;  %1257 = vmatpush.msra.mxu1 %v365_v31 }
  0x3b   : > { %389 = vmatpush.msra.mxu0 %v362_v37  ;;  %1258 = vmatpush.msra.mxu2 %v365_v31 }
  0x3c   : > { %1259 = vmatpush.msra.mxu3 %v365_v31  ;;  %1260 = vmatpush.msra.mxu1 %v364_v34 }
  0x3d   : > { %390 = vmatpush.msra.mxu0 %v361_v38  ;;  %1261 = vmatpush.msra.mxu2 %v364_v34 }
  0x3e   : > { %1262 = vmatpush.msra.mxu3 %v364_v34  ;;  %1263 = vmatpush.msra.mxu1 %v363_v36  ;;  %v483_v34 = vld [vmem:[#allocation3 + $0x50] sm:$0xff] }
  0x3f   : > { %391 = vmatpush.msra.mxu0 %v360_v40  ;;  %1264 = vmatpush.msra.mxu2 %v363_v36 }
  0x40   : > { %517 = vadd.xlane.f32.xlu2 %v1218_v32  ;;  %513 = vadd.xlane.f32.xlu0 %v1214_v33 }
  0x41   : > { %515 = vadd.xlane.f32.xlu1 %v1215_v35  ;;  %392 = vmatmul.f32.vlgmr.msra.gmra.mxu0 %v1190_v5  ;;  %v480_v5 = vld [vmem:[#allocation3 + $0x38] sm:$0xff] }
  0x42   : > { %1265 = vmatpush.msra.mxu3 %v363_v36  ;;  %1266 = vmatpush.msra.mxu1 %v362_v37 }
  0x43   : > { %1267 = vmatpush.msra.mxu2 %v362_v37  ;;  %1303 = vset.pattern.permute.xlu2 %v1364_v42 }
  0x44   : > { %1268 = vmatpush.msra.mxu3 %v362_v37  ;;  %1269 = vmatpush.msra.mxu1 %v361_v38 }
  0x45   : > { %1270 = vmatpush.msra.mxu2 %v361_v38 }
  0x46   : > { %1271 = vmatpush.msra.mxu3 %v361_v38  ;;  %1272 = vmatpush.msra.mxu1 %v360_v40 }
  0x47   : > { %1273 = vmatpush.msra.mxu2 %v360_v40  ;;  %404 = vmatmul.f32.vlgmr.msra.gmra.mxu1 %v1198_v4  ;;  %v479_v4 = vld [vmem:[#allocation3 + $0x30] sm:$0xff] }
  0x48   : > { %519 = vadd.xlane.f32.xlu0 %v1219_v39  ;;  %416 = vmatmul.f32.vlgmr.msra.gmra.mxu2 %v1206_v15 }
  0x49   : > { %395 = vmatmul.f32.gmra.mxu0 %v1191_v8  ;;  %1274 = vmatpush.msra.mxu3 %v360_v40 }
  0x4a   : > { %428 = vmatmul.f32.vlgmr.msra.gmra.mxu3 %v1214_v33 }
  0x4f   : > { %407 = vmatmul.f32.gmra.mxu1 %v1199_v7 }
  0x50   : > { %419 = vmatmul.f32.gmra.mxu2 %v1207_v24 }
  0x51   : > { %398 = vmatmul.f32.gmra.mxu0 %v1194_v6 }
  0x52   : > { %431 = vmatmul.f32.gmra.mxu3 %v1215_v35 }
  0x57   : > { %410 = vmatmul.f32.gmra.mxu1 %v1202_v16 }
  0x58   : > { %422 = vmatmul.f32.gmra.mxu2 %v1210_v26  ;;  %v484_v26 = vld [vmem:[#allocation3 + $0x58] sm:$0xff] }
  0x59   : > { %401 = vmatmul.f32.gmra.mxu0 %v1195_v9 }
  0x5a   : > { %434 = vmatmul.f32.gmra.mxu3 %v1218_v32 }
  0x5f   : > { %413 = vmatmul.f32.gmra.mxu1 %v1203_v18 }
  0x60   : > { %425 = vmatmul.f32.gmra.mxu2 %v1211_v23 }
  0x62   : > { %437 = vmatmul.f32.gmra.mxu3 %v1219_v39 }
  0x93   : > { %v498_v46 = vpop.xlane.xlu2 %497  ;;  %v490_v47 = vpop.xlane.xlu0 %489 }
  0x94   : > { %v525_v48 = vadd.f32 %v498_v46, %v477_v43  ;;  %v521_v49 = vadd.f32 %v490_v47, %v473_v44  ;;  %v494_v50 = vpop.xlane.xlu1 %493 }
  0x95   : > { %v523_v51 = vadd.f32 %v494_v50, %v475_v45 }
  0x96   : > { %542 = vst.msk [vmem:[#allocation3 + $0x20] sm:$0xff] %vm295_vm0, %v525_v48 }
  0x97   : > { %538 = vst.msk [vmem:[#allocation3] sm:$0xff] %vm295_vm0, %v521_v49 }
  0x98   : > { %540 = vst.msk [vmem:[#allocation3 + $0x10] sm:$0xff] %vm295_vm0, %v523_v51 }
  0x9b   : > { %v500_v55 = vpop.xlane.xlu2 %499  ;;  %v492_v56 = vpop.xlane.xlu0 %491 }
  0x9c   : > { %v526_v57 = vadd.f32 %v500_v55, %v478_v52  ;;  %v522_v58 = vadd.f32 %v492_v56, %v474_v53  ;;  %v496_v59 = vpop.xlane.xlu1 %495 }
  0x9d   : > { %v524_v60 = vadd.f32 %v496_v59, %v476_v54  ;;  %v561_v61 = vld [vmem:[#allocation3 + $0x20] sm:$0xff] }
  0x9e   : > { %543 = vst.msk [vmem:[#allocation3 + $0x28] sm:$0xff] %vm295_vm0, %v526_v57  ;;  %v557_v62 = vld [vmem:[#allocation3] sm:$0xff]  ;;  %v1586_v63 = vmax.f32 %v561_v61, 1.0 }
  0x9f   : > { %539 = vst.msk [vmem:[#allocation3 + $0x8] sm:$0xff] %vm295_vm0, %v522_v58  ;;  %v1589_v0 = vmax.f32 %v557_v62, 1.0  ;;  %v559_v1 = vld [vmem:[#allocation3 + $0x10] sm:$0xff] }
  0xa0   : > { %541 = vst.msk [vmem:[#allocation3 + $0x18] sm:$0xff] %vm295_vm0, %v524_v60  ;;  %v1592_v2 = vmax.f32 %v559_v1, 1.0  ;;  %1305 = vrcp.f32 %v1586_v63  ;;  %vm650_vm2 = vweird.f32 %v1586_v63  ;;  %v654_v20 = vand.u32 2147483647, %v1586_v63  ;;  %v487_v1 = vld [vmem:[#allocation3 + $0x70] sm:$0xff] }
  0xa1   : > { %1307 = vrcp.f32 %v1589_v0  ;;  %v598_v14 = vand.u32 2147483647, %v1589_v0  ;;  %vm594_vm1 = vweird.f32 %v1589_v0  ;;  %v600_v24 = vand.u32 2147483648, %v1589_v0 }
  0xa2   : > { %1309 = vrcp.f32 %v1592_v2  ;;  %vm622_vm3 = vweird.f32 %v1592_v2  ;;  %v626_v29 = vand.u32 2147483647, %v1592_v2  ;;  %v628_v32 = vand.u32 2147483648, %v1592_v2 }
  0xa3   : > { %v506_v6 = vpop.xlane.xlu2 %505  ;;  %v502_v7 = vpop.xlane.xlu0 %501  ;;  %vm1624_vm4 = vcmp.eq.f32.partialorder %v598_v14, 8.507059e+37  ;;  %v656_v38 = vand.u32 2147483648, %v1586_v63  ;;  %v601_v43 = vor.u32 1.1754944e-38, %v600_v24  ;;  %vm1649_vm9 = vcmp.eq.f32.partialorder %v654_v20, 8.507059e+37 }
  0xa4   : > { %v529_v8 = vadd.f32 %v506_v6, %v481_v3  ;;  %v527_v9 = vadd.f32 %v502_v7, %v479_v4  ;;  %v504_v10 = vpop.xlane.xlu1 %503  ;;  %vm1645_vm8 = vcmp.eq.f32.partialorder %v626_v29, 8.507059e+37  ;;  %v629_v51 = vor.u32 1.1754944e-38, %v628_v32 }
  0xa5   : > { %v528_v11 = vadd.f32 %v504_v10, %v480_v5  ;;  %v562_v12 = vld [vmem:[#allocation3 + $0x28] sm:$0xff]  ;;  %v657_v61 = vor.u32 1.1754944e-38, %v656_v38 }
  0xa6   : > { %v1597_v13 = vpop.eup %1305  ;;  %546 = vst.msk [vmem:[#allocation3 + $0x40] sm:$0xff] %vm295_vm0, %v529_v8  ;;  %v558_v15 = vld [vmem:[#allocation3 + $0x8] sm:$0xff]  ;;  %v1601_v16 = vmax.f32 %v562_v12, 1.0 }
  0xa7   : > { %v1603_v17 = vpop.eup %1307  ;;  %544 = vst.msk [vmem:[#allocation3 + $0x30] sm:$0xff] %vm295_vm0, %v527_v9  ;;  %v1607_v18 = vmax.f32 %v558_v15, 1.0  ;;  %v646_v19 = vmul.f32 %v1597_v13, %v1586_v63  ;;  %v560_v21 = vld [vmem:[#allocation3 + $0x18] sm:$0xff]  ;;  %vm651_vm11 = vweird.f32 %v1597_v13  ;;  %v486_v9 = vld [vmem:[#allocation3 + $0x68] sm:$0xff] }
  0xa8   : > { %v1310_v22 = vpop.eup %1309  ;;  %v590_v23 = vmul.f32 %v1603_v17, %v1589_v0  ;;  %545 = vst.msk [vmem:[#allocation3 + $0x38] sm:$0xff] %vm295_vm0, %v528_v11  ;;  %v1617_v25 = vmax.f32 %v560_v21, 1.0  ;;  %1311 = vrcp.f32 %v1601_v16  ;;  %vm595_vm6 = vweird.f32 %v1603_v17  ;;  %vm1685_vm13 = vmor %vm650_vm2, %vm651_vm11 }
  0xa9   : > { %v618_v28 = vmul.f32 %v1310_v22, %v1592_v2  ;;  %1313 = vrcp.f32 %v1607_v18  ;;  %v647_v33 = vsub.f32 1.0, %v646_v19  ;;  %vm623_vm5 = vweird.f32 %v1310_v22  ;;  %vm596_vm10 = vmor %vm594_vm1, %vm595_vm6  ;;  %v485_v2 = vld [vmem:[#allocation3 + $0x60] sm:$0xff] }
  0xaa   : > { %v591_v30 = vsub.f32 1.0, %v590_v23  ;;  %1315 = vrcp.f32 %v1617_v25  ;;  %vm1641_vm7 = vmor %vm622_vm3, %vm623_vm5  ;;  %v612_v60 = vand.u32 2147483647, %v1607_v18  ;;  %vm608_vm12 = vweird.f32 %v1607_v18 }
  0xab   : > { %v512_v35 = vpop.xlane.xlu2 %511  ;;  %v508_v36 = vpop.xlane.xlu0 %507  ;;  %v619_v37 = vsub.f32 1.0, %v618_v28  ;;  %v648_v45 = vmul.f32 %v1597_v13, %v647_v33  ;;  %v614_v12 = vand.u32 2147483648, %v1607_v18  ;;  %vm636_vm15 = vweird.f32 %v1617_v25 }
  0xac   : > { %v532_v39 = vadd.f32 %v512_v35, %v484_v26  ;;  %v530_v40 = vadd.f32 %v508_v36, %v482_v27  ;;  %v592_v41 = vmul.f32 %v1603_v17, %v591_v30  ;;  %v510_v42 = vpop.xlane.xlu1 %509  ;;  %vm1698_vm1 = vcmp.eq.f32.partialorder %v612_v60, 8.507059e+37 }
  0xad   : > { %v620_v44 = vmul.f32 %v1310_v22, %v619_v37  ;;  %v531_v46 = vadd.f32 %v510_v42, %v483_v34  ;;  %v649_v56 = vadd.f32 %v1597_v13, %v648_v45  ;;  %v642_v27 = vand.u32 2147483648, %v1617_v25  ;;  %v565_v29 = vld [vmem:[#allocation3 + $0x40] sm:$0xff] }
  0xae   : > { %v1634_v47 = vpop.eup %1311  ;;  %549 = vst.msk [vmem:[#allocation3 + $0x58] sm:$0xff] %vm295_vm0, %v532_v39  ;;  %v593_v48 = vadd.f32 %v1603_v17, %v592_v41  ;;  %v563_v53 = vld [vmem:[#allocation3 + $0x30] sm:$0xff]  ;;  %v615_v31 = vor.u32 1.1754944e-38, %v614_v12  ;;  %v488_v39 = vld [vmem:[#allocation3 + $0x78] sm:$0xff]  ;;  %v1735_v42 = vmax.f32 %v565_v29, 1.0  ;;  %vm664_vm6 = vweird.f32 %v1601_v16 }
  0xaf   : > { %v1653_v54 = vpop.eup %1313  ;;  %547 = vst.msk [vmem:[#allocation3 + $0x48] sm:$0xff] %vm295_vm0, %v530_v40  ;;  %v621_v55 = vadd.f32 %v1310_v22, %v620_v44  ;;  %v1662_v57 = vmax.f32 %v563_v53, 1.0  ;;  %v660_v4 = vmul.f32 %v1634_v47, %v1601_v16  ;;  %v653_v14 = vsel %vm1685_vm13, %v1597_v13, %v649_v56 }
  0xb0   : > { %v597_v58 = vsel %vm596_vm10, %v1603_v17, %v593_v48  ;;  %v604_v59 = vmul.f32 %v1653_v54, %v1607_v18  ;;  %548 = vst.msk [vmem:[#allocation3 + $0x50] sm:$0xff] %vm295_vm0, %v531_v46  ;;  %v1669_v62 = vpop.eup %1315  ;;  %vm609_vm14 = vweird.f32 %v1653_v54  ;;  %v658_v32 = vsel %vm1649_vm9, %v657_v61, %v653_v14  ;;  %v564_v48 = vld [vmem:[#allocation3 + $0x38] sm:$0xff] }
  0xb1   : > { %v602_v0 = vsel %vm1624_vm4, %v601_v43, %v597_v58  ;;  %v625_v3 = vsel %vm1641_vm7, %v1310_v22, %v621_v55  ;;  %1317 = vrcp.f32 %v1662_v57  ;;  %v632_v8 = vmul.f32 %v1669_v62, %v1617_v25  ;;  %vm610_vm3 = vmor %vm608_vm12, %vm609_vm14 }
  0xb2   : > { %847 = vperm.xlu1 %1302, %v602_v0   ;;  %v630_v5 = vsel %vm1645_vm8, %v629_v51, %v625_v3  ;;  %v605_v6 = vsub.f32 1.0, %v604_v59  ;;  %v640_v22 = vand.u32 2147483647, %v1617_v25  ;;  %v661_v24 = vsub.f32 1.0, %v660_v4 }
  0xb3   : > { %v518_v10 = vpop.xlane.xlu2 %517  ;;  %v514_v11 = vpop.xlane.xlu0 %513  ;;  %857 = vperm.xlu0 %1304, %v630_v5   ;;  %v633_v19 = vsub.f32 1.0, %v632_v8  ;;  %vm637_vm2 = vweird.f32 %v1669_v62  ;;  %v682_v33 = vand.u32 2147483647, %v1662_v57  ;;  %v684_v41 = vand.u32 2147483648, %v1662_v57 }
  0xb4   : > { %v535_v63 = vadd.f32 %v518_v10, %v487_v1  ;;  %v533_v15 = vadd.f32 %v514_v11, %v485_v2  ;;  %v606_v17 = vmul.f32 %v1653_v54, %v605_v6  ;;  %v516_v20 = vpop.xlane.xlu1 %515  ;;  %v662_v38 = vmul.f32 %v1634_v47, %v661_v24  ;;  %vm1729_vm4 = vmor %vm636_vm15, %vm637_vm2 }
  0xb5   : > { %v534_v23 = vadd.f32 %v516_v20, %v486_v9  ;;  %v634_v26 = vmul.f32 %v1669_v62, %v633_v19  ;;  %vm1737_vm5 = vcmp.eq.f32.partialorder %v640_v22, 8.507059e+37  ;;  %v643_v44 = vor.u32 1.1754944e-38, %v642_v27  ;;  %v568_v53 = vld [vmem:[#allocation3 + $0x58] sm:$0xff] }
  0xb6   : > { %552 = vst.msk [vmem:[#allocation3 + $0x70] sm:$0xff] %vm295_vm0, %v535_v63  ;;  %v607_v13 = vadd.f32 %v1653_v54, %v606_v17  ;;  %v566_v28 = vld [vmem:[#allocation3 + $0x48] sm:$0xff]  ;;  %vm678_vm7 = vweird.f32 %v1662_v57  ;;  %vm665_vm9 = vweird.f32 %v1634_v47  ;;  %v663_v52 = vadd.f32 %v1634_v47, %v662_v38 }
  0xb7   : > { %v1318_v30 = vpop.eup %1317  ;;  %550 = vst.msk [vmem:[#allocation3 + $0x60] sm:$0xff] %vm295_vm0, %v533_v15  ;;  %v1716_v34 = vmax.f32 %v566_v28, 1.0  ;;  %v635_v36 = vadd.f32 %v1669_v62, %v634_v26  ;;  %vm1749_vm10 = vcmp.eq.f32.partialorder %v682_v33, 8.507059e+37  ;;  %v685_v55 = vor.u32 1.1754944e-38, %v684_v41  ;;  %vm1759_vm11 = vmor %vm664_vm6, %vm665_vm9  ;;  %v567_v8 = vld [vmem:[#allocation3 + $0x50] sm:$0xff] }
  0xb8   : > { %v611_v35 = vsel %vm610_vm3, %v1653_v54, %v607_v13  ;;  %v674_v37 = vmul.f32 %v1318_v30, %v1662_v57  ;;  %551 = vst.msk [vmem:[#allocation3 + $0x68] sm:$0xff] %vm295_vm0, %v534_v23  ;;  %vm679_vm8 = vweird.f32 %v1318_v30  ;;  %v670_v56 = vand.u32 2147483648, %v1601_v16 }
  0xb9   : > { %v616_v18 = vsel %vm1698_vm1, %v615_v31, %v611_v35  ;;  %1319 = vrcp.f32 %v1716_v34  ;;  %v724_v46 = vand.u32 2147483647, %v1716_v34  ;;  %v639_v50 = vsel %vm1729_vm4, %v1669_v62, %v635_v36 }
  0xba   : > { %852 = vperm.xlu2 %1303, %v616_v18   ;;  %867 = vperm.xlu1 %1302, %v658_v32   ;;  %v675_v45 = vsub.f32 1.0, %v674_v37  ;;  %1321 = vrcp.f32 %v1735_v42  ;;  %v726_v59 = vand.u32 2147483648, %v1716_v34  ;;  %v668_v61 = vand.u32 2147483647, %v1601_v16 }
  0xbb   : > { %v520_v25 = vpop.xlane.xlu0 %519  ;;  %v1764_v0 = vmax.f32 %v564_v48, 1.0  ;;  %v644_v2 = vsel %vm1737_vm5, %v643_v44, %v639_v50  ;;  %vm720_vm12 = vweird.f32 %v1716_v34  ;;  %v1774_v4 = vmax.f32 %v568_v53, 1.0 }
  0xbc   : > { %v536_v49 = vadd.f32 %v520_v25, %v488_v39  ;;  %v676_v51 = vmul.f32 %v1318_v30, %v675_v45  ;;  %vm1777_vm13 = vcmp.eq.f32.partialorder %v724_v46, 8.507059e+37  ;;  %v667_v7 = vsel %vm1759_vm11, %v1634_v47, %v663_v52 }
  0xbd   : > { %v710_v57 = vand.u32 2147483647, %v1735_v42  ;;  %v671_v10 = vor.u32 1.1754944e-38, %v670_v56  ;;  %v712_v11 = vand.u32 2147483648, %v1735_v42  ;;  %v727_v14 = vor.u32 1.1754944e-38, %v726_v59  ;;  %v571_v63 = vld [vmem:[#allocation3 + $0x70] sm:$0xff] }
  0xbe   : > { %553 = vst.msk [vmem:[#allocation3 + $0x78] sm:$0xff] %vm295_vm0, %v536_v49  ;;  %v677_v58 = vadd.f32 %v1318_v30, %v676_v51  ;;  %v569_v62 = vld [vmem:[#allocation3 + $0x60] sm:$0xff]  ;;  %vm680_vm0 = vmor %vm678_vm7, %vm679_vm8  ;;  %vm669_vm14 = vcmp.eq.f32.partialorder %v668_v61, 8.507059e+37  ;;  %vm706_vm15 = vweird.f32 %v1735_v42  ;;  %v1792_v17 = vmax.f32 %v567_v8, 1.0 }
  0xbf   : > { %v1320_v1 = vpop.eup %1319  ;;  %v1772_v3 = vmax.f32 %v569_v62, 1.0  ;;  %v672_v15 = vsel %vm669_vm14, %v671_v10, %v667_v7  ;;  %vm1795_vm2 = vcmp.eq.f32.partialorder %v710_v57, 8.507059e+37  ;;  %v713_v22 = vor.u32 1.1754944e-38, %v712_v11  ;;  %v570_v7 = vld [vmem:[#allocation3 + $0x68] sm:$0xff] }
  0xc0   : > { %v681_v5 = vsel %vm680_vm0, %v1318_v30, %v677_v58  ;;  %v716_v16 = vmul.f32 %v1320_v1, %v1716_v34  ;;  %v1322_v47 = vpop.eup %1321  ;;  %vm721_vm1 = vweird.f32 %v1320_v1  ;;  %v1801_v26 = vmax.f32 %v571_v63, 1.0 }
  0xc1   : > { %v686_v9 = vsel %vm1749_vm10, %v685_v55, %v681_v5  ;;  %1323 = vrcp.f32 %v1772_v3  ;;  %v702_v20 = vmul.f32 %v1322_v47, %v1735_v42  ;;  %v766_v23 = vand.u32 2147483647, %v1772_v3  ;;  %vm722_vm4 = vmor %vm720_vm12, %vm721_vm1 }
  0xc2   : > { %862 = vperm.xlu2 %1303, %v644_v2   ;;  %877 = vperm.xlu1 %1302, %v686_v9   ;;  %v717_v12 = vsub.f32 1.0, %v716_v16  ;;  %1325 = vrcp.f32 %v1764_v0  ;;  %v768_v24 = vand.u32 2147483648, %v1772_v3  ;;  %vm762_vm3 = vweird.f32 %v1772_v3 }
  0xc3   : > { %1327 = vrcp.f32 %v1774_v4  ;;  %v703_v28 = vsub.f32 1.0, %v702_v20  ;;  %v696_v29 = vand.u32 2147483647, %v1764_v0  ;;  %vm692_vm5 = vweird.f32 %v1764_v0 }
  0xc4   : > { %v718_v19 = vmul.f32 %v1320_v1, %v717_v12  ;;  %v698_v31 = vand.u32 2147483648, %v1764_v0  ;;  %1329 = vrcp.f32 %v1792_v17  ;;  %vm707_vm6 = vweird.f32 %v1322_v47 }
  0xc5   : > { %v572_v13 = vld [vmem:[#allocation3 + $0x78] sm:$0xff]  ;;  %v704_v36 = vmul.f32 %v1322_v47, %v703_v28  ;;  %vm1817_vm7 = vcmp.eq.f32.partialorder %v766_v23, 8.507059e+37  ;;  %v769_v39 = vor.u32 1.1754944e-38, %v768_v24  ;;  %vm1822_vm8 = vcmp.eq.f32.partialorder %v696_v29, 8.507059e+37  ;;  %vm708_vm9 = vmor %vm706_vm15, %vm707_vm6 }
  0xc6   : > { %v719_v27 = vadd.f32 %v1320_v1, %v718_v19  ;;  %v1809_v32 = vmax.f32 %v572_v13, 1.0  ;;  %v699_v46 = vor.u32 1.1754944e-38, %v698_v31  ;;  %vm748_vm0 = vweird.f32 %v1774_v4 }
  0xc7   : > { %v1324_v30 = vpop.eup %1323  ;;  %v705_v41 = vadd.f32 %v1322_v47, %v704_v36  ;;  %v752_v54 = vand.u32 2147483647, %v1774_v4  ;;  %v754_v60 = vand.u32 2147483648, %v1774_v4  ;;  %vm734_vm15 = vweird.f32 %v1792_v17 }
  0xc8   : > { %v1326_v33 = vpop.eup %1325  ;;  %v723_v35 = vsel %vm722_vm4, %v1320_v1, %v719_v27  ;;  %v758_v37 = vmul.f32 %v1324_v30, %v1772_v3  ;;  %1331 = vrcp.f32 %v1809_v32  ;;  %vm763_vm11 = vweird.f32 %v1324_v30 }
  0xc9   : > { %v1813_v38 = vpop.eup %1327  ;;  %v728_v34 = vsel %vm1777_vm13, %v727_v14, %v723_v35  ;;  %v688_v40 = vmul.f32 %v1326_v33, %v1764_v0  ;;  %vm693_vm10 = vweird.f32 %v1326_v33  ;;  %v709_v48 = vsel %vm708_vm9, %v1322_v47, %v705_v41  ;;  %vm764_vm14 = vmor %vm762_vm3, %vm763_vm11 }
  0xca   : > { %892 = vperm.xlu0 %1304, %v728_v34   ;;  %872 = vperm.xlu2 %1303, %v672_v15   ;;  %v759_v43 = vsub.f32 1.0, %v758_v37  ;;  %v744_v45 = vmul.f32 %v1813_v38, %v1774_v4  ;;  %v1330_v51 = vpop.eup %1329  ;;  %v714_v52 = vsel %vm1795_vm2, %v713_v22, %v709_v48  ;;  %vm1837_vm12 = vmor %vm692_vm5, %vm693_vm10  ;;  %vm749_vm13 = vweird.f32 %v1813_v38 }
  0xcb   : > { %v689_v25 = vsub.f32 1.0, %v688_v40  ;;  %887 = vperm.xlu1 %1302, %v714_v52   ;;  %v730_v58 = vmul.f32 %v1330_v51, %v1792_v17  ;;  %1333 = vrcp.f32 %v1801_v26  ;;  %v740_v1 = vand.u32 2147483648, %v1792_v17  ;;  %vm1857_vm1 = vmor %vm748_vm0, %vm749_vm13 }
  0xcc   : > { %v760_v49 = vmul.f32 %v1324_v30, %v759_v43  ;;  %v745_v50 = vsub.f32 1.0, %v744_v45  ;;  %vm735_vm2 = vweird.f32 %v1330_v51  ;;  %v738_v6 = vand.u32 2147483647, %v1792_v17 }
  0xcd   : > { %v690_v53 = vmul.f32 %v1326_v33, %v689_v25  ;;  %v731_v0 = vsub.f32 1.0, %v730_v58  ;;  %vm753_vm3 = vcmp.eq.f32.partialorder %v752_v54, 8.507059e+37  ;;  %v755_v4 = vor.u32 1.1754944e-38, %v754_v60  ;;  %vm1871_vm4 = vmor %vm734_vm15, %vm735_vm2  ;;  %v816_v58 = vld [vmem:[%s2111_s3 + $0x18] sm:$0xff] }
  0xce   : > { %v761_v42 = vadd.f32 %v1324_v30, %v760_v49  ;;  %v746_v56 = vmul.f32 %v1813_v38, %v745_v50  ;;  %v1332_v2 = vpop.eup %1331  ;;  %v808_v12 = vand.u32 2147483647, %v1809_v32  ;;  %v741_v63 = vor.u32 1.1754944e-38, %v740_v1  ;;  %v405_v49 = vpop.f32.mrf.mxu1 }
  0xcf   : > { %v691_v59 = vadd.f32 %v1326_v33, %v690_v53  ;;  %v800_v9 = vmul.f32 %v1332_v2, %v1809_v32  ;;  %v732_v10 = vmul.f32 %v1330_v51, %v731_v0  ;;  %v586_v47 = vmax.f32 %v570_v7, 1.0  ;;  %v818_v0 = vld [vmem:[%s2111_s3 + $0x28] sm:$0xff] }
  0xd0   : > { %v765_v61 = vsel %vm764_vm14, %v1324_v30, %v761_v42  ;;  %v747_v62 = vadd.f32 %v1813_v38, %v746_v56  ;;  %v810_v20 = vand.u32 2147483648, %v1809_v32  ;;  %vm739_vm5 = vcmp.eq.f32.partialorder %v738_v6, 8.507059e+37  ;;  %v815_v6 = vld [vmem:[%s2111_s3 + $0x10] sm:$0xff] }
  0xd1   : > { %v770_v5 = vsel %vm1817_vm7, %v769_v39, %v765_v61  ;;  %v695_v3 = vsel %vm1837_vm12, %v1326_v33, %v691_v59  ;;  %v801_v11 = vsub.f32 1.0, %v800_v9  ;;  %v1334_v15 = vpop.eup %1333  ;;  %v733_v21 = vadd.f32 %v1330_v51, %v732_v10  ;;  %v417_v61 = vpop.f32.mrf.mxu2 }
  0xd2   : > { %907 = vperm.xlu0 %1304, %v770_v5   ;;  %v700_v57 = vsel %vm1822_vm8, %v699_v46, %v695_v3  ;;  %v751_v8 = vsel %vm1857_vm1, %v1813_v38, %v747_v62  ;;  %vm805_vm6 = vweird.f32 %v1332_v2  ;;  %v786_v23 = vmul.f32 %v1334_v15, %v1801_v26  ;;  %v393_v46 = vpop.f32.mrf.mxu0 }
  0xd3   : > { %882 = vperm.xlu2 %1303, %v700_v57   ;;  %v756_v19 = vsel %vm753_vm3, %v755_v4, %v751_v8  ;;  %v802_v22 = vmul.f32 %v1332_v2, %v801_v11  ;;  %1335 = vrcp.f32 %v586_v47  ;;  %v737_v17 = vsel %vm1871_vm4, %v1330_v51, %v733_v21  ;;  %v814_v51 = vld [vmem:[%s2111_s3 + $0x8] sm:$0xff] }
  0xd4   : > { %902 = vperm.xlu1 %1302, %v756_v19   ;;  %vm804_vm7 = vweird.f32 %v1809_v32  ;;  %v742_v13 = vsel %vm739_vm5, %v741_v63, %v737_v17  ;;  %v787_v27 = vsub.f32 1.0, %v786_v23  ;;  %vm809_vm9 = vcmp.eq.f32.partialorder %v808_v12, 8.507059e+37  ;;  %v817_v12 = vld [vmem:[%s2111_s3 + $0x20] sm:$0xff]  ;;  %v820_v63 = vld [vmem:[%s2111_s3 + $0x38] sm:$0xff]  ;;  %v819_v17 = vld [vmem:[%s2111_s3 + $0x30] sm:$0xff] }
  0xd5   : > { %v803_v24 = vadd.f32 %v1332_v2, %v802_v22  ;;  %vm806_vm8 = vmor %vm804_vm7, %vm805_vm6  ;;  %v811_v28 = vor.u32 1.1754944e-38, %v810_v20  ;;  %vm790_vm10 = vweird.f32 %v1801_v26  ;;  %v796_v29 = vand.u32 2147483648, %v1801_v26  ;;  %v429_v20 = vpop.f32.mrf.mxu3 }
  0xd6   : > { %v788_v31 = vmul.f32 %v1334_v15, %v787_v27  ;;  %vm791_vm11 = vweird.f32 %v1334_v15  ;;  %v794_v33 = vand.u32 2147483647, %v1801_v26  ;;  %vm776_vm13 = vweird.f32 %v586_v47  ;;  %v408_v42 = vpop.f32.mrf.mxu1 }
  0xd7   : > { %v807_v30 = vsel %vm806_vm8, %v1332_v2, %v803_v24  ;;  %vm792_vm0 = vmor %vm790_vm10, %vm791_vm11  ;;  %v797_v32 = vor.u32 1.1754944e-38, %v796_v29  ;;  %v782_v18 = vand.u32 2147483648, %v586_v47  ;;  %v780_v41 = vand.u32 2147483647, %v586_v47  ;;  %v813_v2 = vld [vmem:[%s2111_s3] sm:$0xff] }
  0xd8   : > { %v812_v35 = vsel %vm809_vm9, %v811_v28, %v807_v30  ;;  %v789_v37 = vadd.f32 %v1334_v15, %v788_v31  ;;  %vm795_vm12 = vcmp.eq.f32.partialorder %v794_v33, 8.507059e+37 }
  0xd9   : > { %v1336_v36 = vpop.eup %1335  ;;  %v783_v26 = vor.u32 1.1754944e-38, %v782_v18  ;;  %vm781_vm1 = vcmp.eq.f32.partialorder %v780_v41, 8.507059e+37  ;;  %v420_v10 = vpop.f32.mrf.mxu2  ;;  %v826_v18 = vld [vmem:[%s2111_s3 + $0x68] sm:$0xff] }
  0xda   : > { %922 = vperm.xlu0 %1304, %v812_v35   ;;  %v772_v38 = vmul.f32 %v1336_v36, %v586_v47  ;;  %v793_v34 = vsel %vm792_vm0, %v1334_v15, %v789_v37  ;;  %vm777_vm14 = vweird.f32 %v1336_v36  ;;  %v396_v48 = vpop.f32.mrf.mxu0  ;;  %v822_v35 = vld [vmem:[%s2111_s3 + $0x48] sm:$0xff] }
  0xdb   : > { %897 = vperm.xlu2 %1303, %v742_v13   ;;  %v798_v39 = vsel %vm795_vm12, %v797_v32, %v793_v34  ;;  %vm778_vm15 = vmor %vm776_vm13, %vm777_vm14  ;;  %v823_v13 = vld [vmem:[%s2111_s3 + $0x50] sm:$0xff] }
  0xdc   : > { %v773_v40 = vsub.f32 1.0, %v772_v38  ;;  %917 = vperm.xlu1 %1302, %v798_v39   ;;  %v821_v38 = vld [vmem:[%s2111_s3 + $0x40] sm:$0xff] }
  0xdd   : > { %v432_v33 = vpop.f32.mrf.mxu3 }
  0xde   : > { %v774_v43 = vmul.f32 %v1336_v36, %v773_v40  ;;  %v411_v62 = vpop.f32.mrf.mxu1 }
  0xe0   : > { %v775_v44 = vadd.f32 %v1336_v36, %v774_v43 }
  0xe1   : > { %v423_v23 = vpop.f32.mrf.mxu2 }
  0xe2   : > { %v779_v45 = vsel %vm778_vm15, %v1336_v36, %v775_v44  ;;  %v399_v50 = vpop.f32.mrf.mxu0 }
  0xe3   : > { %v784_v25 = vsel %vm781_vm1, %v783_v26, %v779_v45  ;;  %v825_v45 = vld [vmem:[%s2111_s3 + $0x60] sm:$0xff] }
  0xe4   : > { %912 = vperm.xlu2 %1303, %v784_v25  }
  0xe5   : > { %v435_v43 = vpop.f32.mrf.mxu3 }
  0xe6   : > { %v414_v11 = vpop.f32.mrf.mxu1 }
  0xea   : > { %v402_v55 = vpop.f32.mrf.mxu0 }
 0x114   : > { %v853_v52 = vpop.permute.xlu2 %852 }
 0x115   : > { %v926_v53 = vmul.f32 %v853_v52, %v396_v48  ;;  %v426_v48 = vpop.f32.mrf.mxu2 }
 0x117   : > { %v942_v54 = vadd.f32 %v926_v53, %v814_v51 }
 0x119   : > { %958 = vst [vmem:[%s2111_s3 + $0x8] sm:$0xff] %v942_v54  ;;  %v438_v54 = vpop.f32.mrf.mxu3 }
 0x11c   : > { %v863_v56 = vpop.permute.xlu2 %862 }
 0x11d   : > { %v928_v59 = vmul.f32 %v863_v56, %v402_v55 }
 0x11f   : > { %v944_v60 = vadd.f32 %v928_v59, %v816_v58  ;;  %v827_v59 = vld [vmem:[%s2111_s3 + $0x70] sm:$0xff] }
 0x121   : > { %960 = vst [vmem:[%s2111_s3 + $0x18] sm:$0xff] %v944_v60 }
 0x124   : > { %v873_v1 = vpop.permute.xlu2 %872  ;;  %v848_v5 = vpop.permute.xlu1 %847 }
 0x125   : > { %v930_v3 = vmul.f32 %v873_v1, %v408_v42  ;;  %v925_v16 = vmul.f32 %v848_v5, %v393_v46  ;;  %v858_v7 = vpop.permute.xlu0 %857  ;;  %v828_v42 = vld [vmem:[%s2111_s3 + $0x78] sm:$0xff]  ;;  %v1988_v1 = vld [vmem:[%s2110_s2] ss:$0 sm:$0xff] (%p973_p6) }
 0x126   : > { %v927_v57 = vmul.f32 %v858_v7, %v399_v50  ;;  %v824_v50 = vld [vmem:[%s2111_s3 + $0x58] sm:$0xff] }
 0x127   : > { %v946_v8 = vadd.f32 %v930_v3, %v818_v0  ;;  %v941_v9 = vadd.f32 %v925_v16, %v813_v2  ;;  %v979_v2 = vld [vmem:[%s2111_s3 + $0x8] sm:$0xff] (%p973_p6) }
 0x128   : > { %v943_v4 = vadd.f32 %v927_v57, %v815_v6  ;;  %v981_v3 = vld [vmem:[%s2111_s3 + $0x18] sm:$0xff] (%p973_p6)  ;;  %v999_v6 = vadd.f32 (%p973_p6), %v1988_v1, %v979_v2 }
 0x129   : > { %962 = vst [vmem:[%s2111_s3 + $0x28] sm:$0xff] %v946_v8  ;;  %v1001_v57 = vadd.f32 (%p973_p6), %v1988_v1, %v981_v3 }
 0x12a   : > { %957 = vst [vmem:[%s2111_s3] sm:$0xff] %v941_v9  ;;  %vm1015_vm3 = vcmp.ge.f32.partialorder (%p973_p6), %v999_v6, 0.0 }
 0x12b   : > { %959 = vst [vmem:[%s2111_s3 + $0x10] sm:$0xff] %v943_v4  ;;  %vm1017_vm5 = vcmp.ge.f32.partialorder (%p973_p6), %v1001_v57, 0.0 }
 0x12c   : > { %v868_v14 = vpop.permute.xlu1 %867 }
 0x12d   : > { %v883_v47 = vpop.permute.xlu2 %882  ;;  %v929_v15 = vmul.f32 %v868_v14, %v405_v49 }
 0x12e   : > { %v932_v19 = vmul.f32 %v883_v47, %v414_v11  ;;  %v1031_v47 = vmul.f32 (%p973_p6), 0.01, %v999_v6 }
 0x12f   : > { %v945_v21 = vadd.f32 %v929_v15, %v817_v12 }
 0x130   : > { %v948_v22 = vadd.f32 %v932_v19, %v820_v63  ;;  %v983_v9 = vld [vmem:[%s2111_s3 + $0x28] sm:$0xff] (%p973_p6)  ;;  %v1033_v19 = vmul.f32 (%p973_p6), 0.01, %v1001_v57 }
 0x131   : > { %961 = vst [vmem:[%s2111_s3 + $0x20] sm:$0xff] %v945_v21  ;;  %v978_v0 = vld [vmem:[%s2111_s3] sm:$0xff] (%p973_p6)  ;;  %v1003_v11 = vadd.f32 (%p973_p6), %v1988_v1, %v983_v9  ;;  %v1047_v21 = vsel (%p973_p6), %vm1015_vm3, %v999_v6, %v1031_v47 }
 0x132   : > { %964 = vst [vmem:[%s2111_s3 + $0x38] sm:$0xff] %v948_v22  ;;  %v980_v5 = vld [vmem:[%s2111_s3 + $0x10] sm:$0xff] (%p973_p6)  ;;  %v998_v16 = vadd.f32 (%p973_p6), %v1988_v1, %v978_v0 }
 0x133   : > { %v1000_v7 = vadd.f32 (%p973_p6), %v1988_v1, %v980_v5  ;;  %vm1019_vm7 = vcmp.ge.f32.partialorder (%p973_p6), %v1003_v11, 0.0  ;;  %1063 = vst [vmem:[%s2111_s3 + $0x8] sm:$0xff] (%p973_p6), %v1047_v21 }
 0x134   : > { %v878_v24 = vpop.permute.xlu1 %877  ;;  %vm1014_vm2 = vcmp.ge.f32.partialorder (%p973_p6), %v998_v16, 0.0  ;;  %v1030_v63 = vmul.f32 (%p973_p6), 0.01, %v998_v16 }
 0x135   : > { %v898_v27 = vpop.permute.xlu2 %897  ;;  %v931_v28 = vmul.f32 %v878_v24, %v411_v62  ;;  %vm1016_vm4 = vcmp.ge.f32.partialorder (%p973_p6), %v1000_v7, 0.0  ;;  %v1032_v15 = vmul.f32 (%p973_p6), 0.01, %v1000_v7 }
 0x136   : > { %v935_v29 = vmul.f32 %v898_v27, %v423_v23  ;;  %v1049_v27 = vsel (%p973_p6), %vm1017_vm5, %v1001_v57, %v1033_v19 }
 0x137   : > { %v947_v30 = vadd.f32 %v931_v28, %v819_v17  ;;  %v1035_v28 = vmul.f32 (%p973_p6), 0.01, %v1003_v11  ;;  %1065 = vst [vmem:[%s2111_s3 + $0x18] sm:$0xff] (%p973_p6), %v1049_v27 }
 0x138   : > { %v951_v31 = vadd.f32 %v935_v29, %v823_v13  ;;  %v982_v8 = vld [vmem:[%s2111_s3 + $0x20] sm:$0xff] (%p973_p6)  ;;  %v1048_v13 = vsel (%p973_p6), %vm1016_vm4, %v1000_v7, %v1032_v15 }
 0x139   : > { %963 = vst [vmem:[%s2111_s3 + $0x30] sm:$0xff] %v947_v30  ;;  %v985_v14 = vld [vmem:[%s2111_s3 + $0x38] sm:$0xff] (%p973_p6) }
 0x13a   : > { %967 = vst [vmem:[%s2111_s3 + $0x50] sm:$0xff] %v951_v31 }
 0x13b   : > { %1064 = vst [vmem:[%s2111_s3 + $0x10] sm:$0xff] (%p973_p6), %v1048_v13 }
 0x13c   : > { %v893_v36 = vpop.permute.xlu0 %892 }
 0x13d   : > { %v934_v37 = vmul.f32 %v893_v36, %v420_v10  ;;  %v888_v34 = vpop.permute.xlu1 %887  ;;  %v1002_v10 = vadd.f32 (%p973_p6), %v1988_v1, %v982_v8 }
 0x13e   : > { %v913_v39 = vpop.permute.xlu2 %912  ;;  %v933_v40 = vmul.f32 %v888_v34, %v417_v61 }
 0x13f   : > { %v950_v32 = vadd.f32 %v934_v37, %v822_v35  ;;  %v938_v41 = vmul.f32 %v913_v39, %v432_v33  ;;  %vm1018_vm6 = vcmp.ge.f32.partialorder (%p973_p6), %v1002_v10, 0.0  ;;  %v1034_v22 = vmul.f32 (%p973_p6), 0.01, %v1002_v10 }
 0x140   : > { %v949_v26 = vadd.f32 %v933_v40, %v821_v38  ;;  %v984_v4 = vld [vmem:[%s2111_s3 + $0x30] sm:$0xff] (%p973_p6)  ;;  %v1005_v33 = vadd.f32 (%p973_p6), %v1988_v1, %v985_v14  ;;  %v1051_v35 = vsel (%p973_p6), %vm1019_vm7, %v1003_v11, %v1035_v28 }
 0x141   : > { %966 = vst [vmem:[%s2111_s3 + $0x48] sm:$0xff] %v950_v32  ;;  %v954_v44 = vadd.f32 %v938_v41, %v826_v18  ;;  %v1004_v12 = vadd.f32 (%p973_p6), %v1988_v1, %v984_v4  ;;  %v988_v24 = vld [vmem:[%s2111_s3 + $0x50] sm:$0xff] (%p973_p6)  ;;  %v1050_v30 = vsel (%p973_p6), %vm1018_vm6, %v1002_v10, %v1034_v22 }
 0x142   : > { %965 = vst [vmem:[%s2111_s3 + $0x40] sm:$0xff] %v949_v26  ;;  %v1008_v32 = vadd.f32 (%p973_p6), %v1988_v1, %v988_v24  ;;  %vm1021_vm9 = vcmp.ge.f32.partialorder (%p973_p6), %v1005_v33, 0.0  ;;  %v1037_v39 = vmul.f32 (%p973_p6), 0.01, %v1005_v33 }
 0x143   : > { %970 = vst [vmem:[%s2111_s3 + $0x68] sm:$0xff] %v954_v44  ;;  %vm1020_vm8 = vcmp.ge.f32.partialorder (%p973_p6), %v1004_v12, 0.0  ;;  %v1036_v31 = vmul.f32 (%p973_p6), 0.01, %v1004_v12 }
 0x144   : > { %v908_v25 = vpop.permute.xlu0 %907  ;;  %1066 = vst [vmem:[%s2111_s3 + $0x20] sm:$0xff] (%p973_p6), %v1050_v30  ;;  %vm1024_vm0 = vcmp.ge.f32.partialorder (%p973_p6), %v1008_v32, 0.0  ;;  %v1053_v44 = vsel (%p973_p6), %vm1021_vm9, %v1005_v33, %v1037_v39 }
 0x145   : > { %v937_v46 = vmul.f32 %v908_v25, %v429_v20  ;;  %v1046_v20 = vsel (%p973_p6), %vm1014_vm2, %v998_v16, %v1030_v63  ;;  %v1052_v18 = vsel (%p973_p6), %vm1020_vm8, %v1004_v12, %v1036_v31  ;;  %1067 = vst [vmem:[%s2111_s3 + $0x28] sm:$0xff] (%p973_p6), %v1051_v35  ;;  %v1040_v25 = vmul.f32 (%p973_p6), 0.01, %v1008_v32 }
 0x146   : > { %v903_v51 = vpop.permute.xlu1 %902  ;;  %1062 = vst [vmem:[%s2111_s3] sm:$0xff] (%p973_p6), %v1046_v20 }
 0x147   : > { %v953_v49 = vadd.f32 %v937_v46, %v825_v45  ;;  %v936_v52 = vmul.f32 %v903_v51, %v426_v48  ;;  %1068 = vst [vmem:[%s2111_s3 + $0x30] sm:$0xff] (%p973_p6), %v1052_v18 }
 0x148   : > { %v987_v17 = vld [vmem:[%s2111_s3 + $0x48] sm:$0xff] (%p973_p6)  ;;  %1069 = vst [vmem:[%s2111_s3 + $0x38] sm:$0xff] (%p973_p6), %v1053_v44 }
 0x149   : > { %969 = vst [vmem:[%s2111_s3 + $0x60] sm:$0xff] %v953_v49  ;;  %v952_v53 = vadd.f32 %v936_v52, %v824_v50  ;;  %v986_v23 = vld [vmem:[%s2111_s3 + $0x40] sm:$0xff] (%p973_p6)  ;;  %v1007_v37 = vadd.f32 (%p973_p6), %v1988_v1, %v987_v17  ;;  %v1056_v52 = vsel (%p973_p6), %vm1024_vm0, %v1008_v32, %v1040_v25 }
 0x14a   : > { %v1006_v36 = vadd.f32 (%p973_p6), %v1988_v1, %v986_v23  ;;  %v991_v34 = vld [vmem:[%s2111_s3 + $0x68] sm:$0xff] (%p973_p6)  ;;  %1072 = vst [vmem:[%s2111_s3 + $0x50] sm:$0xff] (%p973_p6), %v1056_v52 }
 0x14b   : > { %968 = vst [vmem:[%s2111_s3 + $0x58] sm:$0xff] %v952_v53  ;;  %vm1023_vm11 = vcmp.ge.f32.partialorder (%p973_p6), %v1007_v37, 0.0  ;;  %v1039_v45 = vmul.f32 (%p973_p6), 0.01, %v1007_v37  ;;  %v1011_v50 = vadd.f32 (%p973_p6), %v1988_v1, %v991_v34 }
 0x14c   : > { %v923_v55 = vpop.permute.xlu0 %922  ;;  %vm1022_vm10 = vcmp.ge.f32.partialorder (%p973_p6), %v1006_v36, 0.0  ;;  %v1038_v26 = vmul.f32 (%p973_p6), 0.01, %v1006_v36 }
 0x14d   : > { %v940_v56 = vmul.f32 %v923_v55, %v438_v54  ;;  %v1055_v51 = vsel (%p973_p6), %vm1023_vm11, %v1007_v37, %v1039_v45  ;;  %vm1027_vm14 = vcmp.ge.f32.partialorder (%p973_p6), %v1011_v50, 0.0 }
 0x14e   : > { %v918_v60 = vpop.permute.xlu1 %917  ;;  %v1054_v46 = vsel (%p973_p6), %vm1022_vm10, %v1006_v36, %v1038_v26  ;;  %1071 = vst [vmem:[%s2111_s3 + $0x48] sm:$0xff] (%p973_p6), %v1055_v51 }
 0x14f   : > { %v956_v58 = vadd.f32 %v940_v56, %v828_v42  ;;  %v939_v61 = vmul.f32 %v918_v60, %v435_v43  ;;  %977 = sbr.rel (!%p973_p6) target bundleno = 353 (0x161), region = 48  ;;  %1070 = vst [vmem:[%s2111_s3 + $0x40] sm:$0xff] (%p973_p6), %v1054_v46  ;;  %v1043_v56 = vmul.f32 (%p973_p6), 0.01, %v1011_v50 }
 0x150   : > { %v990_v38 = vld [vmem:[%s2111_s3 + $0x60] sm:$0xff] (%p973_p6) }
 0x151   : > { %972 = vst [vmem:[%s2111_s3 + $0x78] sm:$0xff] %v956_v58  ;;  %v955_v62 = vadd.f32 %v939_v61, %v827_v59  ;;  %v1010_v49 = vadd.f32 (%p973_p6), %v1988_v1, %v990_v38  ;;  %v1059_v61 = vsel (%p973_p6), %vm1027_vm14, %v1011_v50, %v1043_v56 }
 0x152   : > { %v989_v29 = vld [vmem:[%s2111_s3 + $0x58] sm:$0xff] (%p973_p6)  ;;  %1075 = vst [vmem:[%s2111_s3 + $0x68] sm:$0xff] (%p973_p6), %v1059_v61 }
 0x153   : > { %971 = vst [vmem:[%s2111_s3 + $0x70] sm:$0xff] %v955_v62  ;;  %v1009_v40 = vadd.f32 (%p973_p6), %v1988_v1, %v989_v29  ;;  %vm1026_vm13 = vcmp.ge.f32.partialorder (%p973_p6), %v1010_v49, 0.0  ;;  %v1042_v55 = vmul.f32 (%p973_p6), 0.01, %v1010_v49 }
 0x155   : > { %vm1025_vm12 = vcmp.ge.f32.partialorder %v1009_v40, 0.0  ;;  %v1041_v48 = vmul.f32 0.01, %v1009_v40  ;;  %v1058_v59 = vsel %vm1026_vm13, %v1010_v49, %v1042_v55 }
 0x156   : > { %1074 = vst [vmem:[%s2111_s3 + $0x60] sm:$0xff] %v1058_v59 }
 0x157   : > { %v1057_v42 = vsel %vm1025_vm12, %v1009_v40, %v1041_v48 }
 0x158   : > { %v993_v43 = vld [vmem:[%s2111_s3 + $0x78] sm:$0xff]  ;;  %1073 = vst [vmem:[%s2111_s3 + $0x58] sm:$0xff] %v1057_v42 }
 0x159   : > { %v1013_v54 = vadd.f32 %v1988_v1, %v993_v43 }
 0x15a   : > { %v992_v41 = vld [vmem:[%s2111_s3 + $0x70] sm:$0xff] }
 0x15b   : > { %v1012_v53 = vadd.f32 %v1988_v1, %v992_v41  ;;  %vm1029_vm1 = vcmp.ge.f32.partialorder %v1013_v54, 0.0  ;;  %v1045_v60 = vmul.f32 0.01, %v1013_v54 }
 0x15d   : > { %vm1028_vm15 = vcmp.ge.f32.partialorder %v1012_v53, 0.0  ;;  %v1044_v58 = vmul.f32 0.01, %v1012_v53  ;;  %v1061_v0 = vsel %vm1029_vm1, %v1013_v54, %v1045_v60 }
 0x15e   : > { %1077 = vst [vmem:[%s2111_s3 + $0x78] sm:$0xff] %v1061_v0 }
 0x15f   : > { %v1060_v62 = vsel %vm1028_vm15, %v1012_v53, %v1044_v58 }
 0x160   : > { %1076 = vst [vmem:[%s2111_s3 + $0x70] sm:$0xff] %v1060_v62 }
 0x161 PF: > { %s13_s14 = sadd.s32 1, %s1360_s14   ;;  %s2146_s12 = smov %s1356_s13 }
 0x162   : > { %p10_p7 = scmp.ge.s32.totalorder %s13_s14, 5   ;;  %s2147_s13 = smov %s2149_s15 }
 0x164   :  { %12 = sbr.rel (!%p10_p7) target bundleno = 2 (0x2), region = 81 }

</bundles_post_ra>
